<compile_context>
chip_gen: v7x
topology: tpu7x:2x2x1
jax: 0.10.0
libtpu: 0.0.40
codegen_flags: <defaults>
</compile_context>

<pallas_src>
import functools

import jax
import jax.numpy as jnp
from jax.experimental import pallas as pl
from jax.experimental.pallas import tpu as pltpu

LN_EPS = 1e-5  # PyTorch nn.LayerNorm default


def _layernorm(x, gamma, beta):
    mean = jnp.mean(x, axis=-1, keepdims=True)
    var = jnp.mean((x - mean) ** 2, axis=-1, keepdims=True)  # biased, like torch
    return (x - mean) * jax.lax.rsqrt(var + LN_EPS) * gamma + beta


def encoder_stack_kernel(x_ref, wqkv_ref, wfc_ref,
                         ln1_g_ref, ln1_b_ref,
                         w1_ref, b1_ref, w2_ref, b2_ref,
                         ln2_g_ref, ln2_b_ref,
                         out_ref, ctx_ref, *, h):
    l = pl.program_id(1)                     # layer index (sequential axis)
    TB, S, D = out_ref.shape
    rows = TB * S
    att = D // h

    # First layer of this batch block: seed the resident activation (carried in
    # out_ref, whose block index is constant over the layer axis).
    @pl.when(l == 0)
    def _():
        out_ref[...] = x_ref[...]

    x = out_ref[...].reshape(rows, D).astype(jnp.float32)       # (rows, D) f32

    # ---------------- multi-head self-attention ----------------
    # Fused Q/K/V projection: bf16 MXU operands, f32 accumulation.
    x_bf = x.astype(jnp.bfloat16)
    qkv = jnp.dot(x_bf, wqkv_ref[...],
                  preferred_element_type=jnp.float32)            # (rows, 3D) f32

    # NOTE: reference divides scores by sqrt(h) (NOT sqrt(att_size)).
    # Fold 1/sqrt(h) into q once instead of scaling the (B,S,S) score matrix.
    inv_scale = jnp.float32(1.0) / jnp.sqrt(jnp.float32(h))
    q = (qkv[:, :D] * inv_scale).reshape(TB, S, D).astype(jnp.bfloat16)
    k = qkv[:, D:2 * D].reshape(TB, S, D).astype(jnp.bfloat16)
    v = qkv[:, 2 * D:].reshape(TB, S, D).astype(jnp.bfloat16)

    # Per-head attention (batched over the batch-block dim).  Each head's
    # context lands in ctx_ref at its lane offset so the output projection is a
    # single full-D MXU contraction.
    # TODO(synk): optional attention `mask` argument not implemented (mask=None path).
    # TODO(synk): for long sequences tile the KV axis with an online softmax.
    for hh in range(h):
        lo, hi = hh * att, (hh + 1) * att
        s = jnp.einsum('bqd,bkd->bqk', q[..., lo:hi], k[..., lo:hi],
                       preferred_element_type=jnp.float32)       # (TB, S, S) f32
        s = s - jnp.max(s, axis=-1, keepdims=True)
        e = jnp.exp(s)
        alpha = (e * pl.reciprocal(jnp.sum(e, axis=-1, keepdims=True))
                 ).astype(jnp.bfloat16)                          # exact softmax
        ctx = jnp.einsum('bqk,bkd->bqd', alpha, v[..., lo:hi],
                         preferred_element_type=jnp.float32)     # (TB, S, att)
        ctx_ref[:, lo:hi] = ctx.reshape(rows, att).astype(jnp.bfloat16)

    # One (rows, D) @ (D, D) output projection (full-K MXU contraction).
    att_proj = jnp.dot(ctx_ref[...], wfc_ref[...],
                       preferred_element_type=jnp.float32)       # (rows, D) f32

    # dropout == identity (eval mode)
    norm_att = _layernorm(att_proj + x, ln1_g_ref[...], ln1_b_ref[...])

    # ---------------- position-wise feed-forward ----------------
    hidden = jnp.dot(norm_att.astype(jnp.bfloat16), w1_ref[...],
                     preferred_element_type=jnp.float32) + b1_ref[...]
    hidden = jnp.maximum(hidden, 0.0)
    ff = jnp.dot(hidden.astype(jnp.bfloat16), w2_ref[...],
                 preferred_element_type=jnp.float32) + b2_ref[...]

    y = _layernorm(ff + norm_att, ln2_g_ref[...], ln2_b_ref[...])

    # Carried activation; HBM write-back only happens when the batch-block
    # index advances (i.e. after the last layer of this block).
    out_ref[...] = y.reshape(TB, S, D).astype(out_ref.dtype)


def transformer_encoder(x, params, h, *, batch_block=None):
    """params: tuple of per-layer-stacked arrays from init_params (all f32)."""
    # outer self.dropout(input) is identity in eval mode
    B, S, D = x.shape
    wqkv, wfc, ln1g, ln1b, w1, b1, w2, b2, ln2g, ln2b = params
    n_layers = wqkv.shape[0]
    F = w1.shape[-1]

    # Batch tiling: full sequences per block (attention needs whole S);
    # default targets ~256 rows per block so the MXU sees enough sublanes.
    if batch_block is None:
        batch_block = min(B, max(1, 256 // max(S, 1)))
    batch_block = max(1, min(batch_block, B))
    while B % batch_block:
        batch_block -= 1
    TB = batch_block
    b_blocks = B // TB
    rows = TB * S

    # bf16 MXU weights (halves weight DMA + double-buffered VMEM footprint);
    # biases / LayerNorm params stay f32.
    wqkv_b = wqkv.astype(jnp.bfloat16)
    wfc_b = wfc.astype(jnp.bfloat16)
    w1_b = w1.astype(jnp.bfloat16)
    w2_b = w2.astype(jnp.bfloat16)

    def w_spec(p):  # one layer-slice of a stacked (L, a, b) parameter
        return pl.BlockSpec((None,) + tuple(p.shape[1:]), lambda b, l: (l, 0, 0))

    act_spec = pl.BlockSpec((TB, S, D), lambda b, l: (b, 0, 0))
    weights = (wqkv_b, wfc_b, ln1g, ln1b, w1_b, b1, w2_b, b2, ln2g, ln2b)

    # Scoped-VMEM sizing: double-buffered bf16 weights + x/out activation blocks
    # + ctx scratch + headroom.  Clamped to [32 MiB, 64 MiB] so it is valid on
    # v5e/v6e/v7x alike.
    wbytes = 2 * 2 * (D * 3 * D + D * D + D * F + F * D)          # bf16, 2 buffers
    abytes = 2 * 2 * rows * D * 4 + rows * D * 2                   # x/out blocks + ctx
    vmem_limit = int(min(max(wbytes + abytes + (8 << 20), 32 << 20), 64 << 20))

    flops_per_layer_block = (2 * rows * D * 3 * D       # qkv
                             + 4 * TB * S * S * D       # scores + ctx (all heads)
                             + 2 * rows * D * D         # output projection
                             + 4 * rows * D * F)        # ff1 + ff2
    weight_bytes_layer = 2 * (D * 3 * D + D * D + D * F + F * D) \
        + 4 * (2 * D + F + D + 2 * D)
    cost = pl.CostEstimate(
        flops=int(flops_per_layer_block) * n_layers * b_blocks,
        transcendentals=int(TB * S * S * h + 2 * rows) * n_layers * b_blocks,
        bytes_accessed=int(2 * B * S * D * 4
                           + weight_bytes_layer * n_layers * b_blocks),
    )

    return pl.pallas_call(
        functools.partial(encoder_stack_kernel, h=h),
        out_shape=jax.ShapeDtypeStruct((B, S, D), jnp.float32),
        grid=(b_blocks, n_layers),
        in_specs=[act_spec] + [w_spec(p) for p in weights],
        out_specs=act_spec,
        scratch_shapes=[pltpu.VMEM((rows, D), jnp.bfloat16)],      # head-ctx slab
        compiler_params=pltpu.CompilerParams(
            dimension_semantics=("parallel", "arbitrary"),
            vmem_limit_bytes=vmem_limit),
        cost_estimate=cost,
    )(x, *weights)


def init_params(key, in_size, fc_size, n_layers):
    wqkv_l, wfc_l, ln1g_l, ln1b_l = [], [], [], []
    w1_l, b1_l, w2_l, b2_l, ln2g_l, ln2b_l = [], [], [], [], [], []
    for _ in range(n_layers):
        key, *ks = jax.random.split(key, 8)
        wq = 0.05 * jax.random.normal(ks[0], (in_size, in_size), jnp.float32)
        wk = 0.05 * jax.random.normal(ks[1], (in_size, in_size), jnp.float32)
        wv = 0.05 * jax.random.normal(ks[2], (in_size, in_size), jnp.float32)
        wqkv_l.append(jnp.concatenate([wq, wk, wv], axis=1))      # fused (D, 3D)
        wfc_l.append(0.05 * jax.random.normal(ks[3], (in_size, in_size), jnp.float32))
        ln1g_l.append(jnp.ones((1, in_size), jnp.float32))
        ln1b_l.append(jnp.zeros((1, in_size), jnp.float32))
        w1_l.append(0.05 * jax.random.normal(ks[4], (in_size, fc_size), jnp.float32))
        b1_l.append(0.01 * jax.random.normal(ks[5], (1, fc_size), jnp.float32))
        w2_l.append(0.05 * jax.random.normal(ks[6], (fc_size, in_size), jnp.float32))
        b2_l.append(jnp.zeros((1, in_size), jnp.float32))
        ln2g_l.append(jnp.ones((1, in_size), jnp.float32))
        ln2b_l.append(jnp.zeros((1, in_size), jnp.float32))
    return tuple(jnp.stack(v, axis=0) for v in
                 (wqkv_l, wfc_l, ln1g_l, ln1b_l,
                  w1_l, b1_l, w2_l, b2_l, ln2g_l, ln2b_l))


if __name__ == "__main__":
    B, S, D, F, H, N_LAYERS = 2, 8, 32, 64, 4, 2
    key = jax.random.PRNGKey(0)
    kx, kp = jax.random.split(key)
    x = jax.random.normal(kx, (B, S, D), jnp.float32)
    params = init_params(kp, D, F, N_LAYERS)

    out = transformer_encoder(x, params, H)
    jax.block_until_ready(out)
    assert out.shape == (B, S, D)
    assert bool(jnp.all(jnp.isfinite(out)))
    print("KERNEL_OK")
</pallas_src>

<mosaic_0001>
module attributes {stable_mosaic.version = 11 : i64} {
  func.func @encoder_stack_kernel(%arg0: i32, %arg1: i32, %arg2: memref<2x8x32xf32, #tpu.memory_space<vmem>>, %arg3: memref<1x32x96xbf16, #tpu.memory_space<vmem>>, %arg4: memref<1x32x32xbf16, #tpu.memory_space<vmem>>, %arg5: memref<1x1x32xf32, #tpu.memory_space<vmem>>, %arg6: memref<1x1x32xf32, #tpu.memory_space<vmem>>, %arg7: memref<1x32x64xbf16, #tpu.memory_space<vmem>>, %arg8: memref<1x1x64xf32, #tpu.memory_space<vmem>>, %arg9: memref<1x64x32xbf16, #tpu.memory_space<vmem>>, %arg10: memref<1x1x32xf32, #tpu.memory_space<vmem>>, %arg11: memref<1x1x32xf32, #tpu.memory_space<vmem>>, %arg12: memref<1x1x32xf32, #tpu.memory_space<vmem>>, %arg13: memref<2x8x32xf32, #tpu.memory_space<vmem>>, %arg14: memref<16x32xbf16, #tpu.memory_space<vmem>>) attributes {dimension_semantics = [#tpu.dimension_semantics<parallel>, #tpu.dimension_semantics<arbitrary>], iteration_bounds = array<i64: 1, 2>, scalar_prefetch = 0 : i64, scratch_operands = 1 : i64, tpu.core_type = #tpu.core_type<tc>, window_params = [{transform_indices = @transform_0, window_bounds = array<i64: 2, 8, 32>}, {transform_indices = @transform_1, window_bounds = array<i64: 1, 32, 96>}, {transform_indices = @transform_2, window_bounds = array<i64: 1, 32, 32>}, {transform_indices = @transform_3, window_bounds = array<i64: 1, 1, 32>}, {transform_indices = @transform_4, window_bounds = array<i64: 1, 1, 32>}, {transform_indices = @transform_5, window_bounds = array<i64: 1, 32, 64>}, {transform_indices = @transform_6, window_bounds = array<i64: 1, 1, 64>}, {transform_indices = @transform_7, window_bounds = array<i64: 1, 64, 32>}, {transform_indices = @transform_8, window_bounds = array<i64: 1, 1, 32>}, {transform_indices = @transform_9, window_bounds = array<i64: 1, 1, 32>}, {transform_indices = @transform_10, window_bounds = array<i64: 1, 1, 32>}, {transform_indices = @transform_11, window_bounds = array<i64: 2, 8, 32>}]} {
    %c0_i32 = arith.constant 0 : i32
    %0 = arith.cmpi eq, %arg1, %c0_i32 : i32
    %1 = arith.extui %0 : i1 to i32
    %c0_i32_0 = arith.constant 0 : i32
    %2 = arith.cmpi ne, %1, %c0_i32_0 : i32
    scf.if %2 {
      %c0_75 = arith.constant 0 : index
      %c0_76 = arith.constant 0 : index
      %c0_77 = arith.constant 0 : index
      %176 = vector.load %arg2[%c0_75, %c0_76, %c0_77] : memref<2x8x32xf32, #tpu.memory_space<vmem>>, vector<2x8x32xf32>
      %c0_78 = arith.constant 0 : index
      %c0_79 = arith.constant 0 : index
      %c0_80 = arith.constant 0 : index
      %177 = vector.load %arg13[%c0_78, %c0_79, %c0_80] : memref<2x8x32xf32, #tpu.memory_space<vmem>>, vector<2x8x32xf32>
      tpu.vector_store %arg13[%c0_78, %c0_79, %c0_80], %176 {strides = array<i32>} : memref<2x8x32xf32, #tpu.memory_space<vmem>>, vector<2x8x32xf32>,
    } else {
    }
    %c0 = arith.constant 0 : index
    %c0_1 = arith.constant 0 : index
    %c0_2 = arith.constant 0 : index
    %3 = vector.load %arg13[%c0, %c0_1, %c0_2] : memref<2x8x32xf32, #tpu.memory_space<vmem>>, vector<2x8x32xf32>
    %4 = vector.shape_cast %3 : vector<2x8x32xf32> to vector<16x32xf32>
    %5 = arith.truncf %4 : vector<16x32xf32> to vector<16x32xbf16>
    %c0_3 = arith.constant 0 : index
    %c0_4 = arith.constant 0 : index
    %c0_5 = arith.constant 0 : index
    %6 = vector.load %arg3[%c0_3, %c0_4, %c0_5] : memref<1x32x96xbf16, #tpu.memory_space<vmem>>, vector<1x32x96xbf16>
    %7 = vector.shape_cast %6 : vector<1x32x96xbf16> to vector<32x96xbf16>
    %cst = arith.constant dense<0.000000e+00> : vector<16x96xf32>
    %8 = tpu.matmul %5, %7, %cst {dimension_numbers = #tpu.dot_dimension_numbers<[1], [0], [0], [1], [0, 0, 1, 1], [], []>} : vector<16x32xbf16>, vector<32x96xbf16>, vector<16x96xf32> -> vector<16x96xf32>
    %cst_6 = arith.constant 4.000000e+00 : f32
    %9 = math.sqrt %cst_6 : f32
    %cst_7 = arith.constant 1.000000e+00 : f32
    %10 = arith.divf %cst_7, %9 : f32
    %11 = vector.extract_strided_slice %8 {offsets = [0, 0], sizes = [16, 32], strides = [1, 1]} : vector<16x96xf32> to vector<16x32xf32>
    %12 = vector.broadcast %10 : f32 to vector<16x32xf32>
    %13 = arith.mulf %11, %12 : vector<16x32xf32>
    %14 = vector.shape_cast %13 : vector<16x32xf32> to vector<2x8x32xf32>
    %15 = arith.truncf %14 : vector<2x8x32xf32> to vector<2x8x32xbf16>
    %16 = vector.extract_strided_slice %8 {offsets = [0, 32], sizes = [16, 32], strides = [1, 1]} : vector<16x96xf32> to vector<16x32xf32>
    %17 = vector.shape_cast %16 : vector<16x32xf32> to vector<2x8x32xf32>
    %18 = arith.truncf %17 : vector<2x8x32xf32> to vector<2x8x32xbf16>
    %19 = vector.extract_strided_slice %8 {offsets = [0, 64], sizes = [16, 32], strides = [1, 1]} : vector<16x96xf32> to vector<16x32xf32>
    %20 = vector.shape_cast %19 : vector<16x32xf32> to vector<2x8x32xf32>
    %21 = arith.truncf %20 : vector<2x8x32xf32> to vector<2x8x32xbf16>
    %22 = vector.extract_strided_slice %15 {offsets = [0, 0, 0], sizes = [2, 8, 8], strides = [1, 1, 1]} : vector<2x8x32xbf16> to vector<2x8x8xbf16>
    %23 = vector.extract_strided_slice %18 {offsets = [0, 0, 0], sizes = [2, 8, 8], strides = [1, 1, 1]} : vector<2x8x32xbf16> to vector<2x8x8xbf16>
    "tpu.trace_start"() <{level = 10 : i32, message = "bqd,bkd->bqk"}> : () -> ()
    %cst_8 = arith.constant dense<0.000000e+00> : vector<2x8x8xf32>
    %24 = tpu.matmul %22, %23, %cst_8 {dimension_numbers = #tpu.dot_dimension_numbers<[2], [2], [1], [1], [0, 0, 0, 1, 1, 1], [0], [0]>} : vector<2x8x8xbf16>, vector<2x8x8xbf16>, vector<2x8x8xf32> -> vector<2x8x8xf32>
    "tpu.trace_stop"() : () -> ()
    %cst_9 = arith.constant dense<0xFF800000> : vector<2x8xf32>
    %25 = vector.multi_reduction <maximumf>, %24, %cst_9 [2] : vector<2x8x8xf32> to vector<2x8xf32>
    %26 = vector.shape_cast %25 : vector<2x8xf32> to vector<2x8x1xf32>
    %27 = vector.broadcast %26 : vector<2x8x1xf32> to vector<2x8x8xf32>
    %28 = arith.subf %24, %27 : vector<2x8x8xf32>
    %29 = math.exp %28 : vector<2x8x8xf32>
    %cst_10 = arith.constant dense<0.000000e+00> : vector<2x8xf32>
    %30 = vector.multi_reduction <add>, %29, %cst_10 [2] : vector<2x8x8xf32> to vector<2x8xf32>
    %31 = vector.shape_cast %30 : vector<2x8xf32> to vector<2x8x1xf32>
    %32 = tpu.reciprocal %31 : vector<2x8x1xf32> -> vector<2x8x1xf32>
    %33 = vector.broadcast %32 : vector<2x8x1xf32> to vector<2x8x8xf32>
    %34 = arith.mulf %29, %33 : vector<2x8x8xf32>
    %35 = arith.truncf %34 : vector<2x8x8xf32> to vector<2x8x8xbf16>
    %36 = vector.extract_strided_slice %21 {offsets = [0, 0, 0], sizes = [2, 8, 8], strides = [1, 1, 1]} : vector<2x8x32xbf16> to vector<2x8x8xbf16>
    "tpu.trace_start"() <{level = 10 : i32, message = "bqk,bkd->bqd"}> : () -> ()
    %cst_11 = arith.constant dense<0.000000e+00> : vector<2x8x8xf32>
    %37 = tpu.matmul %35, %36, %cst_11 {dimension_numbers = #tpu.dot_dimension_numbers<[2], [1], [1], [2], [0, 0, 0, 1, 1, 2], [0], [0]>} : vector<2x8x8xbf16>, vector<2x8x8xbf16>, vector<2x8x8xf32> -> vector<2x8x8xf32>
    "tpu.trace_stop"() : () -> ()
    %38 = vector.shape_cast %37 : vector<2x8x8xf32> to vector<16x8xf32>
    %39 = arith.truncf %38 : vector<16x8xf32> to vector<16x8xbf16>
    %c0_12 = arith.constant 0 : index
    %c0_13 = arith.constant 0 : index
    %40 = vector.load %arg14[%c0_12, %c0_13] : memref<16x32xbf16, #tpu.memory_space<vmem>>, vector<16x8xbf16>
    tpu.vector_store %arg14[%c0_12, %c0_13], %39 {strides = array<i32>} : memref<16x32xbf16, #tpu.memory_space<vmem>>, vector<16x8xbf16>,
    %41 = vector.extract_strided_slice %15 {offsets = [0, 0, 8], sizes = [2, 8, 8], strides = [1, 1, 1]} : vector<2x8x32xbf16> to vector<2x8x8xbf16>
    %42 = vector.extract_strided_slice %18 {offsets = [0, 0, 8], sizes = [2, 8, 8], strides = [1, 1, 1]} : vector<2x8x32xbf16> to vector<2x8x8xbf16>
    "tpu.trace_start"() <{level = 10 : i32, message = "bqd,bkd->bqk"}> : () -> ()
    %cst_14 = arith.constant dense<0.000000e+00> : vector<2x8x8xf32>
    %43 = tpu.matmul %41, %42, %cst_14 {dimension_numbers = #tpu.dot_dimension_numbers<[2], [2], [1], [1], [0, 0, 0, 1, 1, 1], [0], [0]>} : vector<2x8x8xbf16>, vector<2x8x8xbf16>, vector<2x8x8xf32> -> vector<2x8x8xf32>
    "tpu.trace_stop"() : () -> ()
    %cst_15 = arith.constant dense<0xFF800000> : vector<2x8xf32>
    %44 = vector.multi_reduction <maximumf>, %43, %cst_15 [2] : vector<2x8x8xf32> to vector<2x8xf32>
    %45 = vector.shape_cast %44 : vector<2x8xf32> to vector<2x8x1xf32>
    %46 = vector.broadcast %45 : vector<2x8x1xf32> to vector<2x8x8xf32>
    %47 = arith.subf %43, %46 : vector<2x8x8xf32>
    %48 = math.exp %47 : vector<2x8x8xf32>
    %cst_16 = arith.constant dense<0.000000e+00> : vector<2x8xf32>
    %49 = vector.multi_reduction <add>, %48, %cst_16 [2] : vector<2x8x8xf32> to vector<2x8xf32>
    %50 = vector.shape_cast %49 : vector<2x8xf32> to vector<2x8x1xf32>
    %51 = tpu.reciprocal %50 : vector<2x8x1xf32> -> vector<2x8x1xf32>
    %52 = vector.broadcast %51 : vector<2x8x1xf32> to vector<2x8x8xf32>
    %53 = arith.mulf %48, %52 : vector<2x8x8xf32>
    %54 = arith.truncf %53 : vector<2x8x8xf32> to vector<2x8x8xbf16>
    %55 = vector.extract_strided_slice %21 {offsets = [0, 0, 8], sizes = [2, 8, 8], strides = [1, 1, 1]} : vector<2x8x32xbf16> to vector<2x8x8xbf16>
    "tpu.trace_start"() <{level = 10 : i32, message = "bqk,bkd->bqd"}> : () -> ()
    %cst_17 = arith.constant dense<0.000000e+00> : vector<2x8x8xf32>
    %56 = tpu.matmul %54, %55, %cst_17 {dimension_numbers = #tpu.dot_dimension_numbers<[2], [1], [1], [2], [0, 0, 0, 1, 1, 2], [0], [0]>} : vector<2x8x8xbf16>, vector<2x8x8xbf16>, vector<2x8x8xf32> -> vector<2x8x8xf32>
    "tpu.trace_stop"() : () -> ()
    %57 = vector.shape_cast %56 : vector<2x8x8xf32> to vector<16x8xf32>
    %58 = arith.truncf %57 : vector<16x8xf32> to vector<16x8xbf16>
    %c0_18 = arith.constant 0 : index
    %c8 = arith.constant 8 : index
    %59 = vector.load %arg14[%c0_18, %c8] : memref<16x32xbf16, #tpu.memory_space<vmem>>, vector<16x8xbf16>
    tpu.vector_store %arg14[%c0_18, %c8], %58 {strides = array<i32>} : memref<16x32xbf16, #tpu.memory_space<vmem>>, vector<16x8xbf16>,
    %60 = vector.extract_strided_slice %15 {offsets = [0, 0, 16], sizes = [2, 8, 8], strides = [1, 1, 1]} : vector<2x8x32xbf16> to vector<2x8x8xbf16>
    %61 = vector.extract_strided_slice %18 {offsets = [0, 0, 16], sizes = [2, 8, 8], strides = [1, 1, 1]} : vector<2x8x32xbf16> to vector<2x8x8xbf16>
    "tpu.trace_start"() <{level = 10 : i32, message = "bqd,bkd->bqk"}> : () -> ()
    %cst_19 = arith.constant dense<0.000000e+00> : vector<2x8x8xf32>
    %62 = tpu.matmul %60, %61, %cst_19 {dimension_numbers = #tpu.dot_dimension_numbers<[2], [2], [1], [1], [0, 0, 0, 1, 1, 1], [0], [0]>} : vector<2x8x8xbf16>, vector<2x8x8xbf16>, vector<2x8x8xf32> -> vector<2x8x8xf32>
    "tpu.trace_stop"() : () -> ()
    %cst_20 = arith.constant dense<0xFF800000> : vector<2x8xf32>
    %63 = vector.multi_reduction <maximumf>, %62, %cst_20 [2] : vector<2x8x8xf32> to vector<2x8xf32>
    %64 = vector.shape_cast %63 : vector<2x8xf32> to vector<2x8x1xf32>
    %65 = vector.broadcast %64 : vector<2x8x1xf32> to vector<2x8x8xf32>
    %66 = arith.subf %62, %65 : vector<2x8x8xf32>
    %67 = math.exp %66 : vector<2x8x8xf32>
    %cst_21 = arith.constant dense<0.000000e+00> : vector<2x8xf32>
    %68 = vector.multi_reduction <add>, %67, %cst_21 [2] : vector<2x8x8xf32> to vector<2x8xf32>
    %69 = vector.shape_cast %68 : vector<2x8xf32> to vector<2x8x1xf32>
    %70 = tpu.reciprocal %69 : vector<2x8x1xf32> -> vector<2x8x1xf32>
    %71 = vector.broadcast %70 : vector<2x8x1xf32> to vector<2x8x8xf32>
    %72 = arith.mulf %67, %71 : vector<2x8x8xf32>
    %73 = arith.truncf %72 : vector<2x8x8xf32> to vector<2x8x8xbf16>
    %74 = vector.extract_strided_slice %21 {offsets = [0, 0, 16], sizes = [2, 8, 8], strides = [1, 1, 1]} : vector<2x8x32xbf16> to vector<2x8x8xbf16>
    "tpu.trace_start"() <{level = 10 : i32, message = "bqk,bkd->bqd"}> : () -> ()
    %cst_22 = arith.constant dense<0.000000e+00> : vector<2x8x8xf32>
    %75 = tpu.matmul %73, %74, %cst_22 {dimension_numbers = #tpu.dot_dimension_numbers<[2], [1], [1], [2], [0, 0, 0, 1, 1, 2], [0], [0]>} : vector<2x8x8xbf16>, vector<2x8x8xbf16>, vector<2x8x8xf32> -> vector<2x8x8xf32>
    "tpu.trace_stop"() : () -> ()
    %76 = vector.shape_cast %75 : vector<2x8x8xf32> to vector<16x8xf32>
    %77 = arith.truncf %76 : vector<16x8xf32> to vector<16x8xbf16>
    %c0_23 = arith.constant 0 : index
    %c16 = arith.constant 16 : index
    %78 = vector.load %arg14[%c0_23, %c16] : memref<16x32xbf16, #tpu.memory_space<vmem>>, vector<16x8xbf16>
    tpu.vector_store %arg14[%c0_23, %c16], %77 {strides = array<i32>} : memref<16x32xbf16, #tpu.memory_space<vmem>>, vector<16x8xbf16>,
    %79 = vector.extract_strided_slice %15 {offsets = [0, 0, 24], sizes = [2, 8, 8], strides = [1, 1, 1]} : vector<2x8x32xbf16> to vector<2x8x8xbf16>
    %80 = vector.extract_strided_slice %18 {offsets = [0, 0, 24], sizes = [2, 8, 8], strides = [1, 1, 1]} : vector<2x8x32xbf16> to vector<2x8x8xbf16>
    "tpu.trace_start"() <{level = 10 : i32, message = "bqd,bkd->bqk"}> : () -> ()
    %cst_24 = arith.constant dense<0.000000e+00> : vector<2x8x8xf32>
    %81 = tpu.matmul %79, %80, %cst_24 {dimension_numbers = #tpu.dot_dimension_numbers<[2], [2], [1], [1], [0, 0, 0, 1, 1, 1], [0], [0]>} : vector<2x8x8xbf16>, vector<2x8x8xbf16>, vector<2x8x8xf32> -> vector<2x8x8xf32>
    "tpu.trace_stop"() : () -> ()
    %cst_25 = arith.constant dense<0xFF800000> : vector<2x8xf32>
    %82 = vector.multi_reduction <maximumf>, %81, %cst_25 [2] : vector<2x8x8xf32> to vector<2x8xf32>
    %83 = vector.shape_cast %82 : vector<2x8xf32> to vector<2x8x1xf32>
    %84 = vector.broadcast %83 : vector<2x8x1xf32> to vector<2x8x8xf32>
    %85 = arith.subf %81, %84 : vector<2x8x8xf32>
    %86 = math.exp %85 : vector<2x8x8xf32>
    %cst_26 = arith.constant dense<0.000000e+00> : vector<2x8xf32>
    %87 = vector.multi_reduction <add>, %86, %cst_26 [2] : vector<2x8x8xf32> to vector<2x8xf32>
    %88 = vector.shape_cast %87 : vector<2x8xf32> to vector<2x8x1xf32>
    %89 = tpu.reciprocal %88 : vector<2x8x1xf32> -> vector<2x8x1xf32>
    %90 = vector.broadcast %89 : vector<2x8x1xf32> to vector<2x8x8xf32>
    %91 = arith.mulf %86, %90 : vector<2x8x8xf32>
    %92 = arith.truncf %91 : vector<2x8x8xf32> to vector<2x8x8xbf16>
    %93 = vector.extract_strided_slice %21 {offsets = [0, 0, 24], sizes = [2, 8, 8], strides = [1, 1, 1]} : vector<2x8x32xbf16> to vector<2x8x8xbf16>
    "tpu.trace_start"() <{level = 10 : i32, message = "bqk,bkd->bqd"}> : () -> ()
    %cst_27 = arith.constant dense<0.000000e+00> : vector<2x8x8xf32>
    %94 = tpu.matmul %92, %93, %cst_27 {dimension_numbers = #tpu.dot_dimension_numbers<[2], [1], [1], [2], [0, 0, 0, 1, 1, 2], [0], [0]>} : vector<2x8x8xbf16>, vector<2x8x8xbf16>, vector<2x8x8xf32> -> vector<2x8x8xf32>
    "tpu.trace_stop"() : () -> ()
    %95 = vector.shape_cast %94 : vector<2x8x8xf32> to vector<16x8xf32>
    %96 = arith.truncf %95 : vector<16x8xf32> to vector<16x8xbf16>
    %c0_28 = arith.constant 0 : index
    %c24 = arith.constant 24 : index
    %97 = vector.load %arg14[%c0_28, %c24] : memref<16x32xbf16, #tpu.memory_space<vmem>>, vector<16x8xbf16>
    tpu.vector_store %arg14[%c0_28, %c24], %96 {strides = array<i32>} : memref<16x32xbf16, #tpu.memory_space<vmem>>, vector<16x8xbf16>,
    %c0_29 = arith.constant 0 : index
    %c0_30 = arith.constant 0 : index
    %98 = vector.load %arg14[%c0_29, %c0_30] : memref<16x32xbf16, #tpu.memory_space<vmem>>, vector<16x32xbf16>
    %c0_31 = arith.constant 0 : index
    %c0_32 = arith.constant 0 : index
    %c0_33 = arith.constant 0 : index
    %99 = vector.load %arg4[%c0_31, %c0_32, %c0_33] : memref<1x32x32xbf16, #tpu.memory_space<vmem>>, vector<1x32x32xbf16>
    %100 = vector.shape_cast %99 : vector<1x32x32xbf16> to vector<32x32xbf16>
    %cst_34 = arith.constant dense<0.000000e+00> : vector<16x32xf32>
    %101 = tpu.matmul %98, %100, %cst_34 {dimension_numbers = #tpu.dot_dimension_numbers<[1], [0], [0], [1], [0, 0, 1, 1], [], []>} : vector<16x32xbf16>, vector<32x32xbf16>, vector<16x32xf32> -> vector<16x32xf32>
    %102 = arith.addf %101, %4 : vector<16x32xf32>
    %c0_35 = arith.constant 0 : index
    %c0_36 = arith.constant 0 : index
    %c0_37 = arith.constant 0 : index
    %103 = vector.load %arg5[%c0_35, %c0_36, %c0_37] : memref<1x1x32xf32, #tpu.memory_space<vmem>>, vector<1x1x32xf32>
    %104 = vector.shape_cast %103 : vector<1x1x32xf32> to vector<1x32xf32>
    %c0_38 = arith.constant 0 : index
    %c0_39 = arith.constant 0 : index
    %c0_40 = arith.constant 0 : index
    %105 = vector.load %arg6[%c0_38, %c0_39, %c0_40] : memref<1x1x32xf32, #tpu.memory_space<vmem>>, vector<1x1x32xf32>
    %106 = vector.shape_cast %105 : vector<1x1x32xf32> to vector<1x32xf32>
    %cst_41 = arith.constant dense<0.000000e+00> : vector<16xf32>
    %107 = vector.multi_reduction <add>, %102, %cst_41 [1] : vector<16x32xf32> to vector<16xf32>
    %108 = vector.shape_cast %107 : vector<16xf32> to vector<16x1xf32>
    %cst_42 = arith.constant 3.200000e+01 : f32
    %109 = vector.broadcast %cst_42 : f32 to vector<16x1xf32>
    %110 = arith.divf %108, %109 : vector<16x1xf32>
    %111 = vector.broadcast %110 : vector<16x1xf32> to vector<16x32xf32>
    %112 = arith.subf %102, %111 : vector<16x32xf32>
    %113 = arith.mulf %112, %112 : vector<16x32xf32>
    %cst_43 = arith.constant dense<0.000000e+00> : vector<16xf32>
    %114 = vector.multi_reduction <add>, %113, %cst_43 [1] : vector<16x32xf32> to vector<16xf32>
    %115 = vector.shape_cast %114 : vector<16xf32> to vector<16x1xf32>
    %cst_44 = arith.constant 3.200000e+01 : f32
    %116 = vector.broadcast %cst_44 : f32 to vector<16x1xf32>
    %117 = arith.divf %115, %116 : vector<16x1xf32>
    %118 = vector.broadcast %110 : vector<16x1xf32> to vector<16x32xf32>
    %119 = arith.subf %102, %118 : vector<16x32xf32>
    %cst_45 = arith.constant 9.99999974E-6 : f32
    %120 = vector.broadcast %cst_45 : f32 to vector<16x1xf32>
    %121 = arith.addf %117, %120 : vector<16x1xf32>
    %122 = math.rsqrt %121 : vector<16x1xf32>
    %123 = vector.broadcast %122 : vector<16x1xf32> to vector<16x32xf32>
    %124 = arith.mulf %119, %123 : vector<16x32xf32>
    %125 = vector.broadcast %104 : vector<1x32xf32> to vector<16x32xf32>
    %126 = arith.mulf %124, %125 : vector<16x32xf32>
    %127 = vector.broadcast %106 : vector<1x32xf32> to vector<16x32xf32>
    %128 = arith.addf %126, %127 : vector<16x32xf32>
    %129 = arith.truncf %128 : vector<16x32xf32> to vector<16x32xbf16>
    %c0_46 = arith.constant 0 : index
    %c0_47 = arith.constant 0 : index
    %c0_48 = arith.constant 0 : index
    %130 = vector.load %arg7[%c0_46, %c0_47, %c0_48] : memref<1x32x64xbf16, #tpu.memory_space<vmem>>, vector<1x32x64xbf16>
    %131 = vector.shape_cast %130 : vector<1x32x64xbf16> to vector<32x64xbf16>
    %cst_49 = arith.constant dense<0.000000e+00> : vector<16x64xf32>
    %132 = tpu.matmul %129, %131, %cst_49 {dimension_numbers = #tpu.dot_dimension_numbers<[1], [0], [0], [1], [0, 0, 1, 1], [], []>} : vector<16x32xbf16>, vector<32x64xbf16>, vector<16x64xf32> -> vector<16x64xf32>
    %c0_50 = arith.constant 0 : index
    %c0_51 = arith.constant 0 : index
    %c0_52 = arith.constant 0 : index
    %133 = vector.load %arg8[%c0_50, %c0_51, %c0_52] : memref<1x1x64xf32, #tpu.memory_space<vmem>>, vector<1x1x64xf32>
    %134 = vector.shape_cast %133 : vector<1x1x64xf32> to vector<1x64xf32>
    %135 = vector.broadcast %134 : vector<1x64xf32> to vector<16x64xf32>
    %136 = arith.addf %132, %135 : vector<16x64xf32>
    %cst_53 = arith.constant 0.000000e+00 : f32
    %137 = vector.broadcast %cst_53 : f32 to vector<16x64xf32>
    %138 = arith.maximumf %136, %137 : vector<16x64xf32>
    %139 = arith.truncf %138 : vector<16x64xf32> to vector<16x64xbf16>
    %c0_54 = arith.constant 0 : index
    %c0_55 = arith.constant 0 : index
    %c0_56 = arith.constant 0 : index
    %140 = vector.load %arg9[%c0_54, %c0_55, %c0_56] : memref<1x64x32xbf16, #tpu.memory_space<vmem>>, vector<1x64x32xbf16>
    %141 = vector.shape_cast %140 : vector<1x64x32xbf16> to vector<64x32xbf16>
    %cst_57 = arith.constant dense<0.000000e+00> : vector<16x32xf32>
    %142 = tpu.matmul %139, %141, %cst_57 {dimension_numbers = #tpu.dot_dimension_numbers<[1], [0], [0], [1], [0, 0, 1, 1], [], []>} : vector<16x64xbf16>, vector<64x32xbf16>, vector<16x32xf32> -> vector<16x32xf32>
    %c0_58 = arith.constant 0 : index
    %c0_59 = arith.constant 0 : index
    %c0_60 = arith.constant 0 : index
    %143 = vector.load %arg10[%c0_58, %c0_59, %c0_60] : memref<1x1x32xf32, #tpu.memory_space<vmem>>, vector<1x1x32xf32>
    %144 = vector.shape_cast %143 : vector<1x1x32xf32> to vector<1x32xf32>
    %145 = vector.broadcast %144 : vector<1x32xf32> to vector<16x32xf32>
    %146 = arith.addf %142, %145 : vector<16x32xf32>
    %147 = arith.addf %146, %128 : vector<16x32xf32>
    %c0_61 = arith.constant 0 : index
    %c0_62 = arith.constant 0 : index
    %c0_63 = arith.constant 0 : index
    %148 = vector.load %arg11[%c0_61, %c0_62, %c0_63] : memref<1x1x32xf32, #tpu.memory_space<vmem>>, vector<1x1x32xf32>
    %149 = vector.shape_cast %148 : vector<1x1x32xf32> to vector<1x32xf32>
    %c0_64 = arith.constant 0 : index
    %c0_65 = arith.constant 0 : index
    %c0_66 = arith.constant 0 : index
    %150 = vector.load %arg12[%c0_64, %c0_65, %c0_66] : memref<1x1x32xf32, #tpu.memory_space<vmem>>, vector<1x1x32xf32>
    %151 = vector.shape_cast %150 : vector<1x1x32xf32> to vector<1x32xf32>
    %cst_67 = arith.constant dense<0.000000e+00> : vector<16xf32>
    %152 = vector.multi_reduction <add>, %147, %cst_67 [1] : vector<16x32xf32> to vector<16xf32>
    %153 = vector.shape_cast %152 : vector<16xf32> to vector<16x1xf32>
    %cst_68 = arith.constant 3.200000e+01 : f32
    %154 = vector.broadcast %cst_68 : f32 to vector<16x1xf32>
    %155 = arith.divf %153, %154 : vector<16x1xf32>
    %156 = vector.broadcast %155 : vector<16x1xf32> to vector<16x32xf32>
    %157 = arith.subf %147, %156 : vector<16x32xf32>
    %158 = arith.mulf %157, %157 : vector<16x32xf32>
    %cst_69 = arith.constant dense<0.000000e+00> : vector<16xf32>
    %159 = vector.multi_reduction <add>, %158, %cst_69 [1] : vector<16x32xf32> to vector<16xf32>
    %160 = vector.shape_cast %159 : vector<16xf32> to vector<16x1xf32>
    %cst_70 = arith.constant 3.200000e+01 : f32
    %161 = vector.broadcast %cst_70 : f32 to vector<16x1xf32>
    %162 = arith.divf %160, %161 : vector<16x1xf32>
    %163 = vector.broadcast %155 : vector<16x1xf32> to vector<16x32xf32>
    %164 = arith.subf %147, %163 : vector<16x32xf32>
    %cst_71 = arith.constant 9.99999974E-6 : f32
    %165 = vector.broadcast %cst_71 : f32 to vector<16x1xf32>
    %166 = arith.addf %162, %165 : vector<16x1xf32>
    %167 = math.rsqrt %166 : vector<16x1xf32>
    %168 = vector.broadcast %167 : vector<16x1xf32> to vector<16x32xf32>
    %169 = arith.mulf %164, %168 : vector<16x32xf32>
    %170 = vector.broadcast %149 : vector<1x32xf32> to vector<16x32xf32>
    %171 = arith.mulf %169, %170 : vector<16x32xf32>
    %172 = vector.broadcast %151 : vector<1x32xf32> to vector<16x32xf32>
    %173 = arith.addf %171, %172 : vector<16x32xf32>
    %174 = vector.shape_cast %173 : vector<16x32xf32> to vector<2x8x32xf32>
    %c0_72 = arith.constant 0 : index
    %c0_73 = arith.constant 0 : index
    %c0_74 = arith.constant 0 : index
    %175 = vector.load %arg13[%c0_72, %c0_73, %c0_74] : memref<2x8x32xf32, #tpu.memory_space<vmem>>, vector<2x8x32xf32>
    tpu.vector_store %arg13[%c0_72, %c0_73, %c0_74], %174 {strides = array<i32>} : memref<2x8x32xf32, #tpu.memory_space<vmem>>, vector<2x8x32xf32>,
    return
  }
  func.func @transform_0(%arg0: i32, %arg1: i32) -> (i32, i32, i32) {
    %c0_i32 = arith.constant 0 : i32
    %c0_i32_0 = arith.constant 0 : i32
    %c0_i32_1 = arith.constant 0 : i32
    return %arg0, %c0_i32, %c0_i32_0 : i32, i32, i32
  }
  func.func @transform_1(%arg0: i32, %arg1: i32) -> (i32, i32, i32) {
    %c0_i32 = arith.constant 0 : i32
    %c0_i32_0 = arith.constant 0 : i32
    %c0_i32_1 = arith.constant 0 : i32
    return %arg1, %c0_i32, %c0_i32_0 : i32, i32, i32
  }
  func.func @transform_2(%arg0: i32, %arg1: i32) -> (i32, i32, i32) {
    %c0_i32 = arith.constant 0 : i32
    %c0_i32_0 = arith.constant 0 : i32
    %c0_i32_1 = arith.constant 0 : i32
    return %arg1, %c0_i32, %c0_i32_0 : i32, i32, i32
  }
  func.func @transform_3(%arg0: i32, %arg1: i32) -> (i32, i32, i32) {
    %c0_i32 = arith.constant 0 : i32
    %c0_i32_0 = arith.constant 0 : i32
    %c0_i32_1 = arith.constant 0 : i32
    return %arg1, %c0_i32, %c0_i32_0 : i32, i32, i32
  }
  func.func @transform_4(%arg0: i32, %arg1: i32) -> (i32, i32, i32) {
    %c0_i32 = arith.constant 0 : i32
    %c0_i32_0 = arith.constant 0 : i32
    %c0_i32_1 = arith.constant 0 : i32
    return %arg1, %c0_i32, %c0_i32_0 : i32, i32, i32
  }
  func.func @transform_5(%arg0: i32, %arg1: i32) -> (i32, i32, i32) {
    %c0_i32 = arith.constant 0 : i32
    %c0_i32_0 = arith.constant 0 : i32
    %c0_i32_1 = arith.constant 0 : i32
    return %arg1, %c0_i32, %c0_i32_0 : i32, i32, i32
  }
  func.func @transform_6(%arg0: i32, %arg1: i32) -> (i32, i32, i32) {
    %c0_i32 = arith.constant 0 : i32
    %c0_i32_0 = arith.constant 0 : i32
    %c0_i32_1 = arith.constant 0 : i32
    return %arg1, %c0_i32, %c0_i32_0 : i32, i32, i32
  }
  func.func @transform_7(%arg0: i32, %arg1: i32) -> (i32, i32, i32) {
    %c0_i32 = arith.constant 0 : i32
    %c0_i32_0 = arith.constant 0 : i32
    %c0_i32_1 = arith.constant 0 : i32
    return %arg1, %c0_i32, %c0_i32_0 : i32, i32, i32
  }
  func.func @transform_8(%arg0: i32, %arg1: i32) -> (i32, i32, i32) {
    %c0_i32 = arith.constant 0 : i32
    %c0_i32_0 = arith.constant 0 : i32
    %c0_i32_1 = arith.constant 0 : i32
    return %arg1, %c0_i32, %c0_i32_0 : i32, i32, i32
  }
  func.func @transform_9(%arg0: i32, %arg1: i32) -> (i32, i32, i32) {
    %c0_i32 = arith.constant 0 : i32
    %c0_i32_0 = arith.constant 0 : i32
    %c0_i32_1 = arith.constant 0 : i32
    return %arg1, %c0_i32, %c0_i32_0 : i32, i32, i32
  }
  func.func @transform_10(%arg0: i32, %arg1: i32) -> (i32, i32, i32) {
    %c0_i32 = arith.constant 0 : i32
    %c0_i32_0 = arith.constant 0 : i32
    %c0_i32_1 = arith.constant 0 : i32
    return %arg1, %c0_i32, %c0_i32_0 : i32, i32, i32
  }
  func.func @transform_11(%arg0: i32, %arg1: i32) -> (i32, i32, i32) {
    %c0_i32 = arith.constant 0 : i32
    %c0_i32_0 = arith.constant 0 : i32
    %c0_i32_1 = arith.constant 0 : i32
    return %arg0, %c0_i32, %c0_i32_0 : i32, i32, i32
  }
}

</mosaic_0001>

<bundles_post_ra>
// kernel: tpu_custom_call.1
= control target key start
LH: loop header
LB: loop body
LE: loop exit
PB: predicated region body
PF: predicated region fallthrough
CT: control target
= control target key end

     0   :  { %s2898_s0 = inlined_call_operand.hbm [shape: f32[2,8,32], index: 0, kind: input, shape index: {}]   ;;  %s2899_s1 = inlined_call_operand.vmem [shape: bf16[2,32,96], index: 1, kind: input, shape index: {}]   ;;  %s2900_s2 = inlined_call_operand.vmem [shape: bf16[2,32,32], index: 2, kind: input, shape index: {}]   ;;  %s2901_s3 = inlined_call_operand.vmem [shape: f32[2,1,32], index: 3, kind: input, shape index: {}]   ;;  %s2902_s4 = inlined_call_operand.vmem [shape: f32[2,1,32], index: 4, kind: input, shape index: {}]   ;;  %s2903_s5 = inlined_call_operand.vmem [shape: bf16[2,32,64], index: 5, kind: input, shape index: {}]   ;;  %s2904_s6 = inlined_call_operand.vmem [shape: f32[2,1,64], index: 6, kind: input, shape index: {}]   ;;  %s2905_s7 = inlined_call_operand.vmem [shape: bf16[2,64,32], index: 7, kind: input, shape index: {}]   ;;  %s2906_s8 = inlined_call_operand.vmem [shape: f32[2,1,32], index: 8, kind: input, shape index: {}]   ;;  %s2907_s9 = inlined_call_operand.vmem [shape: f32[2,1,32], index: 9, kind: input, shape index: {}]   ;;  %s2908_s10 = inlined_call_operand.vmem [shape: f32[2,1,32], index: 10, kind: input, shape index: {}]   ;;  %s2909_s11 = inlined_call_operand.hbm [shape: f32[2,8,32], index: 11, kind: output, shape index: {}]  }
   0x1   :  { %2914 = sst [smem:[#allocation10_spill]] %s2898_s0 }
   0x2   :  { %2915 = sst [smem:[#allocation11_spill]] %s2899_s1 }
   0x3   :  { %2916 = sst [smem:[#allocation12_spill]] %s2900_s2 }
   0x4   :  { %2917 = sst [smem:[#allocation13_spill]] %s2903_s5 }
   0x5   :  { %16 = vsyncpa [#allocation4], 0 }
   0x6   :  { %17 = vsyncpa [#allocation5], 0  ;;  %s2534_s17 = smov 0   ;;  %s2536_s18 = smov 0  }
   0x7   :  { %s2538_s19 = smov 0  }
   0x8 LB: > { %s2913_s20 = sadd.s32 4294967295, %s2451_s19   ;;  %s32_s21 = sadd.s32 1, %s2447_s18  ;;  %s2451_s19 = sphi %s2538_s19, %s23_s19   ;;  %s2447_s18 = sphi %s2536_s18, %s2934_s18   ;;  %s2443_s17 = sphi %s2534_s17, %s2933_s17  }
   0x9   : > { %p33_p0 = scmp.ge.s32.totalorder %s32_s21, 2  ;;  %p2020_p1 = scmp.ge.s32.totalorder %s2451_s19, 1 }
   0xa   : > { %p352_p2 = scmp.lt.s32.totalorder %s2451_s19, 3  ;;  %p2561_p4 = scmp.eq.s32.totalorder %s2913_s20, 0 }
   0xb   : > { %s2936_s21 = smov (%p33_p0, %s32_s21), 0  ;;  %s2453_s24 = smov [#allocation3]  }
   0xc   : > { %2918 = sst [smem:[#allocation9_spill]] %s2936_s21  ;;  %p2555_p3 = pnand %p2020_p1, %p352_p2 }
   0xd   : > { %s2920_s23 = scalar_select %p2561_p4, 1, 0 }
   0xe   : > { %s2919_s22 = scalar_select %p2555_p3, 1, 0 }
   0xf   : > { %p2264_p5 = pneg %p2555_p3  ;;  %s367_s25 = sshll.u32 %s2453_s24, 4  ;;  %s368_s25 = int_to_ptr.vmem [resolvable:$true] %s367_s25 }
  0x10   : > { %s2922_s0 = sld [smem:[#allocation10_spill]] }
  0x11   : > { %p2569_p6 = pnand %p2561_p4, %p2264_p5 }
  0x13   : > { %p2369_p8 = pneg %p2569_p6 }
  0x16   : > { %s2367_s29 = scalar_lea.hbm %s2922_s0, 256 }
  0x17   : > { %p2368_p7 = scmp.ne.s32.totalorder %s2922_s0, %s2367_s29  ;;  %p2374_p11 = scmp.lt.u32.totalorder %s2367_s29, %s2922_s0 }
  0x19   : > { %p2370_p9 = pnand %p2369_p8, %p2368_p7 }
  0x1b   : > { %p2371_p10 = pneg %p2370_p9 }
  0x1d   : > { %p2376_p12 = pnand %p2374_p11, %p2371_p10 }
  0x1f   : > { %2379 = shalt.err (!%p2376_p12)
}
  0x20   : > { %s2380_s15 = scalar_lea.vmem %s368_s25, 256  ;;  %p2388_p2 = scmp.lt.s32.totalorder %s368_s25, %s368_s25 }
  0x21   : > { %p2381_p13 = scmp.ne.s32.totalorder %s368_s25, %s2380_s15  ;;  %p2389_p5 = scmp.lt.s32.totalorder %s2380_s15, %s2380_s15 }
  0x23   : > { %p2383_p0 = pnand %p2381_p13, %p2369_p8  ;;  %p2390_p4 = por %p2389_p5, %p2388_p2 }
  0x25   : > { %p2384_p1 = pneg %p2383_p0 }
  0x27   : > { %p2391_p3 = pnand %p2390_p4, %p2384_p1 }
  0x29   : > { %2394 = shalt.err (!%p2391_p3)
}
  0x2a   : > { %s2454_s16 = smov 128   ;;  %s2455_s24 = smov 8  }
  0x2b   : > { %2267 = dma.hbm_to_vmem [thread:$0]  (!%p2569_p6), %s2922_s0, 256, %s368_s25, [#allocation4], %s2454_s16, %s2454_s16, %s2455_s24  }
  0x2c   : > { %p2923_p7 = scmp.ne.s32.totalorder %s2919_s22, 0 }
  0x2d   : > { %p2924_p9 = scmp.ne.s32.totalorder (!%p2923_p7), %s2920_s23, 0 }
  0x2e   : > { %451 = sbr.rel (%p2923_p7) target bundleno = 4191 (0x105f), region = 64 }
  0x35   : > { %2434 = dma.done.wait (%p2924_p9), [#allocation4], 256  }
  0x36   : > { %2436 = vsyncadd (%p2924_p9), [#allocation4], 4294967040  ;;  %p520_p3 = scmp.lt.s32.totalorder %s2443_s17, 1  ;;  %s2925_s1 = sld [smem:[#allocation11_spill]] }
  0x37   : > { %s2926_s2 = sld [smem:[#allocation12_spill]]  ;;  %s2927_s5 = sld [smem:[#allocation13_spill]] }
  0x38   : > { %s2597_s29 = scalar_select %p520_p3, %s2443_s17, 1 }
  0x39   : > { %p2033_p4 = scmp.ne.s32.totalorder %s2443_s17, 0 }
  0x3a   : > { %s2074_s22 = sshll.u32 %s2597_s29, 4  ;;  %s543_s30 = scalar_lea.vmem %s2904_s6, %s2597_s29  ;;  %v564_v0 = vld [vmem:[#allocation3] sm:$0xff] (!%p2033_p4)  ;;  %vm566_vm0 = vcmask (!%p2033_p4), 261120   ;;  %v565_v1 = vld [vmem:[#allocation3 + $0x8] sm:$0xff] (!%p2033_p4) }
  0x3b   : > { %s2077_s23 = sshll.u32 %s2597_s29, 5  ;;  %s551_s24 = scalar_lea.vmem %s2906_s8, %s2597_s29  ;;  %567 = vst.msk [vmem:[#allocation6] sm:$0xff] (!%p2033_p4), %vm566_vm0, %v564_v0  ;;  %568 = vst.msk [vmem:[#allocation6 + $0x8] sm:$0xff] (!%p2033_p4), %vm566_vm0, %v565_v1 }
  0x3c   : > { %s524_s13 = scalar_lea.vmem %s2925_s1, %s2074_s22  ;;  %s2629_s14 = scalar_lea.vmem %s2905_s7, %s2077_s23 }
  0x3d   : > { %s2610_s16 = scalar_lea.vmem %s2926_s2, %s2074_s22  ;;  %s2619_s21 = scalar_lea.vmem %s2927_s5, %s2074_s22 }
  0x3e   : > { %s554_s0 = scalar_lea.vmem %s2907_s9, %s2597_s29  ;;  %s557_s5 = scalar_lea.vmem %s2908_s10, %s2597_s29 }
  0x3f   : > { %563 = sbr.rel (%p2033_p4) target bundleno = 70 (0x46), region = 72 }
  0x46 PF: > { %v2317_v2 = vld [vmem:[%s524_s13] sm:$0xff]   ;;  %v2456_v3 = vmov 0.0   ;;  %v2318_v4 = vld [vmem:[%s524_s13 + $0x8] sm:$0xff]   ;;  %vm2457_vm1 = vmmov 0   ;;  %v2648_v5 = vld [vmem:[#allocation6] sm:$0xff]  ;;  %vm588_vm2 = vcmask 261120  }
  0x47   : > { %2124 = vmatprep.subr.bf16.mxu0 %v2456_v3  ;;  %2132 = vmatprep.subr.bf16.mxu1 %v2456_v3  ;;  %v2650_v6 = vld [vmem:[#allocation6 + $0x8] sm:$0xff]  ;;  %s2458_s1 = smov 96   ;;  %vm642_vm3 = vcmask 64512   ;;  %s2459_s2 = smov 64   ;;  %vm767_vm4 = vcmask 1043456   ;;  %vm1088_vm5 = vcmask 130112  }
  0x48   : > { %2125 = vmatpush3.bf16.msra.mxu0 %v2317_v2  ;;  %2128 = vmatprep.mubr.msk.bf16.mxu0 %vm2457_vm1, %v2456_v3  ;;  %v571_v7 = vpack.c.bf16 %v2650_v6, %v2648_v5  ;;  %s2460_s17 = smov 88   ;;  %s2461_s13 = smov 120   ;;  %vm1315_vm6 = vcmask 195712   ;;  %vm1542_vm7 = vcmask 261312   ;;  %vm1760_vm8 = vcmask 523264  }
  0x49   : > { %2126 = vmatprep.subr.bf16.mxu0 %v2456_v3  ;;  %2134 = vmatprep.mubr.msk.bf16.mxu1 %vm2457_vm1, %v2456_v3  ;;  %s2462_s28 = smov 56   ;;  %s2463_s25 = smov 80  }
  0x4a   : > { %s2464_s26 = smov 112   ;;  %s2465_s23 = smov 48  }
  0x4b   : > { %s2466_s12 = smov 72   ;;  %s2467_s15 = smov 104  }
  0x4c   : > { %2127 = vmatpush3.bf16.msra.mxu0 %v2318_v4  ;;  %s2468_s27 = smov 40   ;;  %s2469_s20 = smov 8  }
  0x4d   : > { %2138 = vmatprep.subr.bf16.mxu0 %v2456_v3  ;;  %s2470_s22 = smov 16  }
  0x4f   : > { %2129 = vmatmul.mubr.msk.bf16.vlgmr.msra.gmra.mrb[0].mxu0 %vm588_vm2, %v571_v7 }
  0x50   : > { %2140 = vmatprep.mubr.msk.bf16.mxu0 %vm2457_vm1, %v2456_v3 }
 0x122   : > { %v626_v8 = vpop.f32.mrb[0].mxu0 }
 0x123   : > { %v2661_v9 = vpack.c.bf16 %v626_v8, %v626_v8  ;;  %v2130_v10 = vpop.f32.mrb[1].mxu0  ;;  %v633_v16 = vmul.f32 0.5, %v626_v8 }
 0x124   : > { %v629_v11 = vpop.f32.mrb[2].mxu0 }
 0x125   : > { %640 = vrot.lane.b32.xlu0 %v2661_v9, %s2458_s1  ;;  %v2131_v12 = vpop.f32.mrb[3].mxu0  ;;  %v2664_v13 = vpack.c.bf16 %v629_v11, %v629_v11  ;;  %v2670_v19 = vpack.c.bf16 %v633_v16, %v633_v16  ;;  %v634_v20 = vmul.f32 0.5, %v629_v11 }
 0x127   : > { %v2677_v21 = vpack.c.bf16 %v634_v20, %v634_v20 }
 0x129   : > { %690 = vrot.lane.b32.xlu0 %v2664_v13, %s2458_s1  ;;  %s2471_s1 = smov 24  }
 0x197   : > { %v641_v14 = vpop.permute.xlu0 %640 }
 0x198   : > { %v647_v15 = vsel %vm642_vm3, %v641_v14, 0 }
 0x199   : > { %2133 = vmatpush3.bf16.xpose.msra.mxu1 %v647_v15 }
 0x19a   : > { %2144 = vmatprep.subr.bf16.mxu1 %v2456_v3 }
 0x19b   : > { %v691_v17 = vpop.permute.xlu0 %690 }
 0x19c   : > { %v696_v18 = vsel %vm642_vm3, %v691_v17, 0 }
 0x19d   : > { %2139 = vmatpush3.bf16.xpose.msra.mxu0 %v696_v18 }
 0x19e   : > { %2150 = vmatprep.subr.bf16.mxu0 %v2456_v3 }
 0x1a0   : > { %2135 = vmatmul.mubr.msk.bf16.vlgmr.msra.gmra.mrb[0].mxu1 %vm642_vm3, %v2670_v19 }
 0x1a1   : > { %2146 = vmatprep.mubr.msk.bf16.mxu1 %vm2457_vm1, %v2456_v3 }
 0x1a4   : > { %2141 = vmatmul.mubr.msk.bf16.vlgmr.msra.gmra.mrb[4].mxu0 %vm642_vm3, %v2677_v21 }
 0x1a5   : > { %2152 = vmatprep.mubr.msk.bf16.mxu0 %vm2457_vm1, %v2456_v3 }
 0x273   : > { %v683_v22 = vpop.f32.mrb[0].mxu1 }
 0x274   : > { %v2136_v23 = vpop.f32.mrb[1].mxu1  ;;  %v738_v24 = vsel %vm642_vm3, %v683_v22, -inf }
 0x275   : > { %739 = vmax.xlane.f32.xlu1 %v738_v24  ;;  %v686_v25 = vpop.f32.mrb[2].mxu1 }
 0x276   : > { %v2137_v26 = vpop.f32.mrb[3].mxu1 }
 0x277   : > { %v732_v27 = vpop.f32.mrb[4].mxu0 }
 0x278   : > { %v2142_v28 = vpop.f32.mrb[5].mxu0  ;;  %v741_v29 = vsel %vm642_vm3, %v732_v27, -inf }
 0x279   : > { %742 = vmax.xlane.f32.xlu1 %v741_v29  ;;  %v735_v30 = vpop.f32.mrb[6].mxu0 }
 0x27a   : > { %v2143_v31 = vpop.f32.mrb[7].mxu0 }
 0x28a   : > { %762 = vrot.lane.b32.xlu1 %v2661_v9, %s2459_s2 }
 0x28e   : > { %811 = vrot.lane.b32.xlu1 %v2664_v13, %s2459_s2  ;;  %s2928_s2 = scalar_lea.vmem %s2901_s3, %s2597_s29 }
 0x292   : > { %864 = vrot.lane.b32.xlu1 %v2661_v9, %s2460_s17 }
 0x302   : > { %v740_v32 = vpop.xlane.xlu1 %739 }
 0x303   : > { %v744_v33 = vsub.f32 %v683_v22, %v740_v32 }
 0x305   : > { %v746_v34 = vmul.f32 1.442695, %v744_v33 }
 0x306   : > { %v743_v35 = vpop.xlane.xlu1 %742 }
 0x307   : > { %2327 = vpow2.f32 %v746_v34  ;;  %v745_v36 = vsub.f32 %v732_v27, %v743_v35 }
 0x309   : > { %v748_v37 = vmul.f32 1.442695, %v745_v36 }
 0x30a   : > { %v763_v38 = vpop.permute.xlu1 %762 }
 0x30b   : > { %2329 = vpow2.f32 %v748_v37  ;;  %v769_v39 = vsel %vm767_vm4, %v763_v38, 0 }
 0x30c   : > { %2145 = vmatpush3.bf16.msra.mxu1 %v769_v39 }
 0x30d   : > { %2156 = vmatprep.subr.bf16.mxu1 %v2456_v3 }
 0x30e   : > { %v812_v40 = vpop.permute.xlu1 %811 }
 0x30f   : > { %v817_v41 = vsel %vm767_vm4, %v812_v40, 0 }
 0x310   : > { %2151 = vmatpush3.bf16.msra.mxu0 %v817_v41 }
 0x311   : > { %v2328_v42 = vpop.eup %2327  ;;  %2162 = vmatprep.subr.bf16.mxu0 %v2456_v3 }
 0x312   : > { %v750_v43 = vsel %vm642_vm3, %v2328_v42, 0.0  ;;  %v865_v46 = vpop.permute.xlu1 %864 }
 0x313   : > { %751 = vadd.xlane.f32.xlu0 %v750_v43  ;;  %v870_v53 = vsel %vm642_vm3, %v865_v46, 0 }
 0x315   : > { %v2330_v44 = vpop.eup %2329 }
 0x316   : > { %v753_v45 = vsel %vm642_vm3, %v2330_v44, 0.0 }
 0x317   : > { %754 = vadd.xlane.f32.xlu1 %v753_v45 }
 0x328   : > { %915 = vrot.lane.b32.xlu1 %v2664_v13, %s2460_s17 }
 0x329   : > { %862 = vrot.lane.b32.xlu0 %v2670_v19, %s2461_s13 }
 0x32c   : > { %913 = vrot.lane.b32.xlu1 %v2677_v21, %s2461_s13 }
 0x3a0   : > { %v752_v47 = vpop.xlane.xlu0 %751 }
 0x3a1   : > { %2331 = vrcp.f32 %v752_v47 }
 0x3a4   : > { %v755_v48 = vpop.xlane.xlu1 %754  ;;  %v863_v58 = vpop.permute.xlu0 %862 }
 0x3a5   : > { %2333 = vrcp.f32 %v755_v48 }
 0x3a8   : > { %v916_v55 = vpop.permute.xlu1 %915 }
 0x3a9   : > { %v921_v57 = vsel %vm642_vm3, %v916_v55, 0 }
 0x3ab   : > { %v2332_v49 = vpop.eup %2331 }
 0x3ac   : > { %v758_v50 = vmul.f32 %v2332_v49, %v2328_v42  ;;  %v914_v59 = vpop.permute.xlu1 %913 }
 0x3ae   : > { %v760_v51 = vpack.c.bf16 %v758_v50, %v758_v50 }
 0x3af   : > { %v2334_v52 = vpop.eup %2333 }
 0x3b0   : > { %v759_v54 = vmul.f32 %v2334_v52, %v2330_v44  ;;  %2147 = vmatmul.mubr.msk.bf16.vlgmr.msra.gmra.mrb[4].mxu1 %vm642_vm3, %v760_v51 }
 0x3b1   : > { %2157 = vmatpush3.bf16.xpose.msra.mxu1 %v870_v53  ;;  %2158 = vmatprep.mubr.msk.bf16.mxu1 %vm2457_vm1, %v2456_v3 }
 0x3b2   : > { %v761_v56 = vpack.c.bf16 %v759_v54, %v759_v54  ;;  %2168 = vmatprep.subr.bf16.mxu1 %v2456_v3 }
 0x3b4   : > { %2153 = vmatmul.mubr.msk.bf16.vlgmr.msra.gmra.mrb[8].mxu0 %vm642_vm3, %v761_v56 }
 0x3b5   : > { %2163 = vmatpush3.bf16.xpose.msra.mxu0 %v921_v57  ;;  %2164 = vmatprep.mubr.msk.bf16.mxu0 %vm2457_vm1, %v2456_v3 }
 0x3b6   : > { %2174 = vmatprep.subr.bf16.mxu0 %v2456_v3 }
 0x3b8   : > { %2159 = vmatmul.mubr.msk.bf16.vlgmr.msra.gmra.mrb[8].mxu1 %vm642_vm3, %v863_v58 }
 0x3b9   : > { %2170 = vmatprep.mubr.msk.bf16.mxu1 %vm2457_vm1, %v2456_v3 }
 0x3bc   : > { %2165 = vmatmul.mubr.msk.bf16.vlgmr.msra.gmra.mrb[12].mxu0 %vm642_vm3, %v914_v59 }
 0x3bd   : > { %2176 = vmatprep.mubr.msk.bf16.mxu0 %vm2457_vm1, %v2456_v3 }
 0x483   : > { %v805_v60 = vpop.f32.mrb[4].mxu1 }
 0x484   : > { %v2148_v61 = vpop.f32.mrb[5].mxu1 }
 0x485   : > { %v808_v62 = vpop.f32.mrb[6].mxu1 }
 0x486   : > { %v2149_v63 = vpop.f32.mrb[7].mxu1 }
 0x487   : > { %v853_v0 = vpop.f32.mrb[8].mxu0 }
 0x488   : > { %v859_v1 = vpack.c.bf16 %v853_v0, %v805_v60  ;;  %v2154_v2 = vpop.f32.mrb[9].mxu0 }
 0x489   : > { %v856_v4 = vpop.f32.mrb[10].mxu0 }
 0x48a   : > { %860 = vst.msk [vmem:[#allocation2] sm:$0xff] %vm642_vm3, %v859_v1  ;;  %v2155_v7 = vpop.f32.mrb[11].mxu0 }
 0x48b   : > { %v906_v8 = vpop.f32.mrb[8].mxu1 }
 0x48c   : > { %v2160_v10 = vpop.f32.mrb[9].mxu1  ;;  %v963_v11 = vsel %vm642_vm3, %v906_v8, -inf }
 0x48d   : > { %964 = vmax.xlane.f32.xlu1 %v963_v11  ;;  %v909_v12 = vpop.f32.mrb[10].mxu1 }
 0x48e   : > { %v2161_v14 = vpop.f32.mrb[11].mxu1 }
 0x48f   : > { %v957_v15 = vpop.f32.mrb[12].mxu0 }
 0x490   : > { %v2166_v16 = vpop.f32.mrb[13].mxu0  ;;  %v966_v17 = vsel %vm642_vm3, %v957_v15, -inf }
 0x491   : > { %967 = vmax.xlane.f32.xlu0 %v966_v17  ;;  %v960_v18 = vpop.f32.mrb[14].mxu0 }
 0x492   : > { %v2167_v20 = vpop.f32.mrb[15].mxu0 }
 0x49e   : > { %987 = vrot.lane.b32.xlu1 %v2661_v9, %s2462_s28 }
 0x4a2   : > { %1092 = vrot.lane.b32.xlu1 %v2661_v9, %s2463_s25 }
 0x4a7   : > { %1035 = vrot.lane.b32.xlu0 %v2664_v13, %s2462_s28  ;;  %s2929_s28 = scalar_lea.vmem %s2902_s4, %s2597_s29 }
 0x4ab   : > { %1090 = vrot.lane.b32.xlu0 %v2670_v19, %s2464_s26 }
 0x51a   : > { %v965_v22 = vpop.xlane.xlu1 %964 }
 0x51b   : > { %v969_v23 = vsub.f32 %v906_v8, %v965_v22 }
 0x51d   : > { %v971_v24 = vmul.f32 1.442695, %v969_v23 }
 0x51e   : > { %v988_v25 = vpop.permute.xlu1 %987  ;;  %v968_v26 = vpop.xlane.xlu0 %967 }
 0x51f   : > { %2335 = vpow2.f32 %v971_v24  ;;  %v993_v27 = vsel %vm767_vm4, %v988_v25, 0  ;;  %v970_v28 = vsub.f32 %v957_v15, %v968_v26 }
 0x520   : > { %2169 = vmatpush3.bf16.msra.mxu1 %v993_v27 }
 0x521   : > { %v973_v29 = vmul.f32 1.442695, %v970_v28  ;;  %2180 = vmatprep.subr.bf16.mxu1 %v2456_v3 }
 0x522   : > { %v1036_v30 = vpop.permute.xlu0 %1035  ;;  %v1093_v36 = vpop.permute.xlu1 %1092 }
 0x523   : > { %2337 = vpow2.f32 %v973_v29  ;;  %v1041_v31 = vsel %vm767_vm4, %v1036_v30, 0  ;;  %v1098_v43 = vsel %vm642_vm3, %v1093_v36, 0 }
 0x524   : > { %2175 = vmatpush3.bf16.msra.mxu0 %v1041_v31 }
 0x525   : > { %2186 = vmatprep.subr.bf16.mxu0 %v2456_v3 }
 0x526   : > { %v1091_v48 = vpop.permute.xlu0 %1090 }
 0x529   : > { %v2336_v32 = vpop.eup %2335 }
 0x52a   : > { %v975_v33 = vsel %vm642_vm3, %v2336_v32, 0.0 }
 0x52b   : > { %976 = vadd.xlane.f32.xlu1 %v975_v33 }
 0x52d   : > { %v2338_v34 = vpop.eup %2337 }
 0x52e   : > { %v978_v35 = vsel %vm642_vm3, %v2338_v34, 0.0 }
 0x52f   : > { %979 = vadd.xlane.f32.xlu1 %v978_v35 }
 0x540   : > { %1142 = vrot.lane.b32.xlu1 %v2664_v13, %s2463_s25 }
 0x544   : > { %1140 = vrot.lane.b32.xlu1 %v2677_v21, %s2464_s26 }
 0x5b8   : > { %v977_v37 = vpop.xlane.xlu1 %976 }
 0x5b9   : > { %2339 = vrcp.f32 %v977_v37 }
 0x5bc   : > { %v980_v38 = vpop.xlane.xlu1 %979 }
 0x5bd   : > { %2341 = vrcp.f32 %v980_v38 }
 0x5c0   : > { %v1143_v45 = vpop.permute.xlu1 %1142 }
 0x5c1   : > { %v1148_v47 = vsel %vm642_vm3, %v1143_v45, 0 }
 0x5c3   : > { %v2340_v39 = vpop.eup %2339 }
 0x5c4   : > { %v983_v40 = vmul.f32 %v2340_v39, %v2336_v32  ;;  %v1141_v49 = vpop.permute.xlu1 %1140 }
 0x5c6   : > { %v985_v41 = vpack.c.bf16 %v983_v40, %v983_v40 }
 0x5c7   : > { %v2342_v42 = vpop.eup %2341 }
 0x5c8   : > { %v984_v44 = vmul.f32 %v2342_v42, %v2338_v34  ;;  %2171 = vmatmul.mubr.msk.bf16.vlgmr.msra.gmra.mrb[12].mxu1 %vm642_vm3, %v985_v41 }
 0x5c9   : > { %2181 = vmatpush3.bf16.xpose.msra.mxu1 %v1098_v43  ;;  %2182 = vmatprep.mubr.msk.bf16.mxu1 %vm2457_vm1, %v2456_v3 }
 0x5ca   : > { %v986_v46 = vpack.c.bf16 %v984_v44, %v984_v44  ;;  %2192 = vmatprep.subr.bf16.mxu1 %v2456_v3 }
 0x5cc   : > { %2177 = vmatmul.mubr.msk.bf16.vlgmr.msra.gmra.mrb[16].mxu0 %vm642_vm3, %v986_v46 }
 0x5cd   : > { %2187 = vmatpush3.bf16.xpose.msra.mxu0 %v1148_v47  ;;  %2188 = vmatprep.mubr.msk.bf16.mxu0 %vm2457_vm1, %v2456_v3 }
 0x5ce   : > { %2198 = vmatprep.subr.bf16.mxu0 %v2456_v3 }
 0x5d0   : > { %2183 = vmatmul.mubr.msk.bf16.vlgmr.msra.gmra.mrb[16].mxu1 %vm642_vm3, %v1091_v48 }
 0x5d1   : > { %2194 = vmatprep.mubr.msk.bf16.mxu1 %vm2457_vm1, %v2456_v3 }
 0x5d4   : > { %2189 = vmatmul.mubr.msk.bf16.vlgmr.msra.gmra.mrb[20].mxu0 %vm642_vm3, %v1141_v49 }
 0x5d5   : > { %2200 = vmatprep.mubr.msk.bf16.mxu0 %vm2457_vm1, %v2456_v3 }
 0x69b   : > { %v2744_v50 = vpop.f32.mrb[12].mxu1 }
 0x69c   : > { %v2172_v51 = vpop.f32.mrb[13].mxu1 }
 0x69d   : > { %v1032_v52 = vpop.f32.mrb[14].mxu1 }
 0x69e   : > { %v2173_v53 = vpop.f32.mrb[15].mxu1 }
 0x69f   : > { %v2746_v54 = vpop.f32.mrb[16].mxu0 }
 0x6a0   : > { %v1083_v55 = vpack.c.bf16 %v2746_v54, %v2744_v50  ;;  %v2178_v56 = vpop.f32.mrb[17].mxu0 }
 0x6a1   : > { %v1080_v57 = vpop.f32.mrb[18].mxu0 }
 0x6a2   : > { %v2179_v58 = vpop.f32.mrb[19].mxu0 }
 0x6a3   : > { %v1134_v59 = vpop.f32.mrb[16].mxu1 }
 0x6a4   : > { %v2184_v60 = vpop.f32.mrb[17].mxu1  ;;  %v1190_v61 = vsel %vm642_vm3, %v1134_v59, -inf }
 0x6a5   : > { %1191 = vmax.xlane.f32.xlu0 %v1190_v61  ;;  %v1137_v62 = vpop.f32.mrb[18].mxu1 }
 0x6a6   : > { %v2185_v63 = vpop.f32.mrb[19].mxu1 }
 0x6a7   : > { %v1184_v0 = vpop.f32.mrb[20].mxu0 }
 0x6a8   : > { %v2190_v1 = vpop.f32.mrb[21].mxu0  ;;  %v1193_v2 = vsel %vm642_vm3, %v1184_v0, -inf }
 0x6a9   : > { %1194 = vmax.xlane.f32.xlu1 %v1193_v2  ;;  %v1187_v4 = vpop.f32.mrb[22].mxu0 }
 0x6aa   : > { %v2191_v7 = vpop.f32.mrb[23].mxu0 }
 0x6ba   : > { %1214 = vrot.lane.b32.xlu1 %v2661_v9, %s2465_s23 }
 0x6be   : > { %1319 = vrot.lane.b32.xlu1 %v2661_v9, %s2466_s12 }
 0x6c2   : > { %1369 = vrot.lane.b32.xlu1 %v2664_v13, %s2466_s12 }
 0x6c6   : > { %1367 = vrot.lane.b32.xlu1 %v2677_v21, %s2467_s15 }
 0x732   : > { %v1192_v8 = vpop.xlane.xlu0 %1191 }
 0x733   : > { %v1196_v10 = vsub.f32 %v1134_v59, %v1192_v8 }
 0x735   : > { %v1198_v11 = vmul.f32 1.442695, %v1196_v10 }
 0x736   : > { %v1195_v12 = vpop.xlane.xlu1 %1194 }
 0x737   : > { %2343 = vpow2.f32 %v1198_v11  ;;  %v1197_v14 = vsub.f32 %v1184_v0, %v1195_v12 }
 0x739   : > { %v1200_v15 = vmul.f32 1.442695, %v1197_v14 }
 0x73a   : > { %v1215_v16 = vpop.permute.xlu1 %1214 }
 0x73b   : > { %2345 = vpow2.f32 %v1200_v15  ;;  %v1220_v17 = vsel %vm767_vm4, %v1215_v16, 0 }
 0x73c   : > { %2193 = vmatpush3.bf16.msra.mxu1 %v1220_v17 }
 0x73d   : > { %2204 = vmatprep.subr.bf16.mxu1 %v2456_v3 }
 0x73e   : > { %v1320_v28 = vpop.permute.xlu1 %1319 }
 0x73f   : > { %v1325_v32 = vsel %vm642_vm3, %v1320_v28, 0 }
 0x741   : > { %v2344_v18 = vpop.eup %2343 }
 0x742   : > { %v1202_v20 = vsel %vm642_vm3, %v2344_v18, 0.0 }
 0x743   : > { %1203 = vadd.xlane.f32.xlu0 %v1202_v20 }
 0x745   : > { %v2346_v22 = vpop.eup %2345 }
 0x746   : > { %v1205_v21 = vsel %vm642_vm3, %v2346_v22, 0.0 }
 0x747   : > { %1206 = vadd.xlane.f32.xlu0 %v1205_v21  ;;  %v2320_v21 = vld [vmem:[%s2610_s16 + $0x8] sm:$0xff]  }
 0x75d   : > { %1262 = vrot.lane.b32.xlu0 %v2664_v13, %s2465_s23 }
 0x761   : > { %1317 = vrot.lane.b32.xlu0 %v2670_v19, %s2467_s15  ;;  %v1370_v19 = vpop.permute.xlu1 %1369 }
 0x762   : > { %v1375_v35 = vsel %vm642_vm3, %v1370_v19, 0 }
 0x765   : > { %v1368_v37 = vpop.permute.xlu1 %1367 }
 0x7d0   : > { %v1204_v23 = vpop.xlane.xlu0 %1203 }
 0x7d1   : > { %2347 = vrcp.f32 %v1204_v23 }
 0x7d4   : > { %v1207_v24 = vpop.xlane.xlu0 %1206 }
 0x7d5   : > { %2349 = vrcp.f32 %v1207_v24 }
 0x7d8   : > { %v1263_v25 = vpop.permute.xlu0 %1262 }
 0x7d9   : > { %v1268_v26 = vsel %vm767_vm4, %v1263_v25, 0 }
 0x7da   : > { %2199 = vmatpush3.bf16.msra.mxu0 %v1268_v26 }
 0x7db   : > { %v2348_v27 = vpop.eup %2347  ;;  %2210 = vmatprep.subr.bf16.mxu0 %v2456_v3 }
 0x7dc   : > { %v1210_v29 = vmul.f32 %v2348_v27, %v2344_v18  ;;  %v1318_v36 = vpop.permute.xlu0 %1317 }
 0x7de   : > { %v1212_v30 = vpack.c.bf16 %v1210_v29, %v1210_v29 }
 0x7df   : > { %v2350_v31 = vpop.eup %2349 }
 0x7e0   : > { %v1211_v33 = vmul.f32 %v2350_v31, %v2346_v22  ;;  %2195 = vmatmul.mubr.msk.bf16.vlgmr.msra.gmra.mrb[20].mxu1 %vm642_vm3, %v1212_v30  ;;  %v2319_v22 = vld [vmem:[%s2610_s16] sm:$0xff]  }
 0x7e1   : > { %2205 = vmatpush3.bf16.xpose.msra.mxu1 %v1325_v32  ;;  %2206 = vmatprep.mubr.msk.bf16.mxu1 %vm2457_vm1, %v2456_v3 }
 0x7e2   : > { %v1213_v34 = vpack.c.bf16 %v1211_v33, %v1211_v33  ;;  %2216 = vmatprep.subr.bf16.mxu1 %v2456_v3 }
 0x7e4   : > { %2201 = vmatmul.mubr.msk.bf16.vlgmr.msra.gmra.mrb[24].mxu0 %vm642_vm3, %v1213_v34 }
 0x7e5   : > { %2211 = vmatpush3.bf16.xpose.msra.mxu0 %v1375_v35  ;;  %2212 = vmatprep.mubr.msk.bf16.mxu0 %vm2457_vm1, %v2456_v3 }
 0x7e6   : > { %2222 = vmatprep.subr.bf16.mxu0 %v2456_v3 }
 0x7e8   : > { %2207 = vmatmul.mubr.msk.bf16.vlgmr.msra.gmra.mrb[24].mxu1 %vm642_vm3, %v1318_v36 }
 0x7e9   : > { %2218 = vmatprep.mubr.msk.bf16.mxu1 %vm2457_vm1, %v2456_v3 }
 0x7ec   : > { %2213 = vmatmul.mubr.msk.bf16.vlgmr.msra.gmra.mrb[28].mxu0 %vm642_vm3, %v1368_v37 }
 0x7ed   : > { %2224 = vmatprep.mubr.msk.bf16.mxu0 %vm2457_vm1, %v2456_v3 }
 0x8b3   : > { %v1256_v38 = vpop.f32.mrb[20].mxu1 }
 0x8b4   : > { %v2196_v39 = vpop.f32.mrb[21].mxu1 }
 0x8b5   : > { %v1259_v40 = vpop.f32.mrb[22].mxu1 }
 0x8b6   : > { %v2197_v41 = vpop.f32.mrb[23].mxu1 }
 0x8b7   : > { %v1304_v42 = vpop.f32.mrb[24].mxu0 }
 0x8b8   : > { %v1310_v43 = vpack.c.bf16 %v1304_v42, %v1256_v38  ;;  %v2202_v44 = vpop.f32.mrb[25].mxu0 }
 0x8b9   : > { %v1307_v45 = vpop.f32.mrb[26].mxu0 }
 0x8ba   : > { %v2203_v46 = vpop.f32.mrb[27].mxu0 }
 0x8bb   : > { %v1361_v47 = vpop.f32.mrb[24].mxu1 }
 0x8bc   : > { %v2208_v48 = vpop.f32.mrb[25].mxu1  ;;  %v1417_v49 = vsel %vm642_vm3, %v1361_v47, -inf }
 0x8bd   : > { %1418 = vmax.xlane.f32.xlu0 %v1417_v49  ;;  %v1364_v51 = vpop.f32.mrb[26].mxu1  ;;  %v2321_v49 = vld [vmem:[%s2619_s21] sm:$0xff]  }
 0x8be   : > { %v2209_v52 = vpop.f32.mrb[27].mxu1  ;;  %v2322_v51 = vld [vmem:[%s2619_s21 + $0x8] sm:$0xff]  }
 0x8bf   : > { %v1411_v53 = vpop.f32.mrb[28].mxu0  ;;  %v2323_v52 = vld [vmem:[%s2629_s14] sm:$0xff]  }
 0x8c0   : > { %v2214_v56 = vpop.f32.mrb[29].mxu0  ;;  %v1420_v57 = vsel %vm642_vm3, %v1411_v53, -inf }
 0x8c1   : > { %1421 = vmax.xlane.f32.xlu1 %v1420_v57  ;;  %v1414_v58 = vpop.f32.mrb[30].mxu0 }
 0x8c2   : > { %v2215_v59 = vpop.f32.mrb[31].mxu0 }
 0x8d2   : > { %1441 = vrot.lane.b32.xlu1 %v2661_v9, %s2468_s27 }
 0x8d6   : > { %1085 = vrot.lane.b32.xlu1 %v1083_v55, %s2469_s20 }
 0x8da   : > { %1312 = vrot.lane.b32.xlu1 %v1310_v43, %s2470_s22 }
 0x94a   : > { %v1419_v60 = vpop.xlane.xlu0 %1418 }
 0x94b   : > { %v1423_v61 = vsub.f32 %v1361_v47, %v1419_v60 }
 0x94d   : > { %v1425_v62 = vmul.f32 1.442695, %v1423_v61 }
 0x94e   : > { %v1422_v63 = vpop.xlane.xlu1 %1421 }
 0x94f   : > { %2351 = vpow2.f32 %v1425_v62  ;;  %v1424_v0 = vsub.f32 %v1411_v53, %v1422_v63  ;;  %v2324_v53 = vld [vmem:[%s2629_s14 + $0x8] sm:$0xff]   ;;  %v2056_v63 = vld [vmem:[%s2928_s2] ss:$0 sm:$0xff] }
 0x951   : > { %v1427_v1 = vmul.f32 1.442695, %v1424_v0 }
 0x952   : > { %v1442_v2 = vpop.permute.xlu1 %1441 }
 0x953   : > { %2353 = vpow2.f32 %v1427_v1  ;;  %v1447_v4 = vsel %vm767_vm4, %v1442_v2, 0 }
 0x954   : > { %2217 = vmatpush3.bf16.msra.mxu1 %v1447_v4 }
 0x955   : > { %2228 = vmatprep.subr.bf16.mxu1 %v2456_v3 }
 0x956   : > { %v1086_v9 = vpop.permute.xlu1 %1085 }
 0x957   : > { %1089 = vst.msk [vmem:[#allocation2] sm:$0xff] %vm1088_vm5, %v1086_v9  ;;  %v2057_v9 = vld [vmem:[%s2929_s28] ss:$0 sm:$0xff] }
 0x959   : > { %v2352_v50 = vpop.eup %2351 }
 0x95a   : > { %v1313_v54 = vpop.permute.xlu1 %1312  ;;  %v1429_v55 = vsel %vm642_vm3, %v2352_v50, 0.0 }
 0x95b   : > { %1316 = vst.msk [vmem:[#allocation2] sm:$0xff] %vm1315_vm6, %v1313_v54  ;;  %1430 = vadd.xlane.f32.xlu0 %v1429_v55 }
 0x95d   : > { %v2354_v7 = vpop.eup %2353 }
 0x95e   : > { %v1432_v8 = vsel %vm642_vm3, %v2354_v7, 0.0 }
 0x95f   : > { %1433 = vadd.xlane.f32.xlu0 %v1432_v8  ;;  %v2325_v8 = vld [vmem:[%s2629_s14 + $0x10] sm:$0xff]  }
 0x975   : > { %1489 = vrot.lane.b32.xlu0 %v2664_v13, %s2468_s27  ;;  %s2472_s27 = smov [#allocation6]  }
 0x976   : > { %s1862_s22 = sshll.u32 %s2472_s27, 4  ;;  %s1863_s22 = int_to_ptr.vmem [resolvable:$true] %s1862_s22 }
 0x977   : > { %s2395_s29 = scalar_lea.vmem %s1863_s22, 256  ;;  %p2402_p12 = scmp.lt.s32.totalorder %s1863_s22, %s1863_s22 }
 0x978   : > { %p2396_p8 = scmp.ne.s32.totalorder %s1863_s22, %s2395_s29  ;;  %p2403_p13 = scmp.lt.s32.totalorder %s2395_s29, %s2395_s29 }
 0x97a   : > { %p2404_p0 = por %p2403_p13, %p2402_p12 }
 0x9e8   : > { %v1431_v10 = vpop.xlane.xlu0 %1430 }
 0x9e9   : > { %2355 = vrcp.f32 %v1431_v10  ;;  %v2326_v10 = vld [vmem:[%s2629_s14 + $0x18] sm:$0xff]  }
 0x9ec   : > { %v1434_v11 = vpop.xlane.xlu0 %1433 }
 0x9ed   : > { %2357 = vrcp.f32 %v1434_v11  ;;  %v2058_v11 = vld [vmem:[%s543_s30] ss:$0 sm:$0xff] }
 0x9f0   : > { %v1490_v12 = vpop.permute.xlu0 %1489 }
 0x9f1   : > { %v1495_v14 = vsel %vm767_vm4, %v1490_v12, 0 }
 0x9f2   : > { %2223 = vmatpush3.bf16.msra.mxu0 %v1495_v14 }
 0x9f3   : > { %v2356_v15 = vpop.eup %2355  ;;  %2236 = vmatprep.subr.bf16.mxu0 %v2456_v3 }
 0x9f4   : > { %v1437_v16 = vmul.f32 %v2356_v15, %v2352_v50 }
 0x9f6   : > { %v1439_v17 = vpack.c.bf16 %v1437_v16, %v1437_v16 }
 0x9f7   : > { %v2358_v18 = vpop.eup %2357 }
 0x9f8   : > { %v1438_v20 = vmul.f32 %v2358_v18, %v2354_v7  ;;  %2219 = vmatmul.mubr.msk.bf16.vlgmr.msra.gmra.mrb[28].mxu1 %vm642_vm3, %v1439_v17 }
 0x9f9   : > { %2232 = vmatprep.mubr.msk.bf16.mxu1 %vm2457_vm1, %v2456_v3  ;;  %2229 = vmatpush3.bf16.msra.mxu1 %v2319_v22 }
 0x9fa   : > { %v1440_v13 = vpack.c.bf16 %v1438_v20, %v1438_v20  ;;  %2230 = vmatprep.subr.bf16.mxu1 %v2456_v3 }
 0x9fc   : > { %2225 = vmatmul.mubr.msk.bf16.vlgmr.msra.gmra.mrb[32].mxu0 %vm642_vm3, %v1440_v13 }
 0x9fd   : > { %2240 = vmatprep.mubr.msk.bf16.mxu0 %vm2457_vm1, %v2456_v3  ;;  %2231 = vmatpush3.bf16.msra.mxu1 %v2320_v21 }
 0x9fe   : > { %2244 = vmatprep.subr.bf16.mxu1 %v2456_v3  ;;  %2237 = vmatpush3.bf16.msra.mxu0 %v2321_v49  ;;  %v2069_v49 = vld [vmem:[%s557_s5] ss:$0 sm:$0xff] }
 0x9ff   : > { %2238 = vmatprep.subr.bf16.mxu0 %v2456_v3 }
 0xa02   : > { %2239 = vmatpush3.bf16.msra.mxu0 %v2322_v51 }
 0xacb   : > { %v1483_v23 = vpop.f32.mrb[28].mxu1 }
 0xacc   : > { %v2220_v24 = vpop.f32.mrb[29].mxu1 }
 0xacd   : > { %v1486_v25 = vpop.f32.mrb[30].mxu1 }
 0xace   : > { %v2221_v26 = vpop.f32.mrb[31].mxu1 }
 0xacf   : > { %v1531_v27 = vpop.f32.mrb[32].mxu0 }
 0xad0   : > { %v1537_v28 = vpack.c.bf16 %v1531_v27, %v1483_v23  ;;  %v2226_v29 = vpop.f32.mrb[33].mxu0 }
 0xad1   : > { %v1534_v30 = vpop.f32.mrb[34].mxu0 }
 0xad2   : > { %1539 = vrot.lane.b32.xlu0 %v1537_v28, %s2471_s1  ;;  %v2227_v31 = vpop.f32.mrb[35].mxu0  ;;  %s2930_s1 = sadd.s32 4294967295, %s2451_s19  }
 0xad3   : > { %p2860_p6 = scmp.eq.s32.totalorder %s2930_s1, 1 }
 0xad5   : > { %p2397_p10 = pnand %p2396_p8, %p2860_p6 }
 0xad7   : > { %p2398_p11 = pneg %p2397_p10 }
 0xad9   : > { %p2405_p1 = pnand %p2404_p0, %p2398_p11 }
 0xb44   : > { %v1540_v32 = vpop.permute.xlu0 %1539 }
 0xb45   : > { %1543 = vst.msk [vmem:[#allocation2] sm:$0xff] %vm1542_vm7, %v1540_v32 }
 0xb4c   : > { %v1544_v33 = vld [vmem:[#allocation2] sm:$0xff] }
 0xb4d   : > { %2233 = vmatmul.mubr.msk.bf16.vlgmr.msra.gmra.mrb[32].mxu1 %vm588_vm2, %v1544_v33 }
 0xb4e   : > { %2252 = vmatprep.mubr.msk.bf16.mxu1 %vm2457_vm1, %v2456_v3  ;;  %2245 = vmatpush3.bf16.msra.mxu1 %v2323_v52 }
 0xb4f   : > { %2246 = vmatprep.subr.bf16.mxu1 %v2456_v3 }
 0xb52   : > { %2247 = vmatpush3.bf16.msra.mxu1 %v2324_v53 }
 0xb53   : > { %2248 = vmatprep.subr.bf16.mxu1 %v2456_v3 }
 0xb56   : > { %2249 = vmatpush3.bf16.msra.mxu1 %v2325_v8 }
 0xb57   : > { %2250 = vmatprep.subr.bf16.mxu1 %v2456_v3  ;;  %v2062_v3 = vld [vmem:[%s551_s24] ss:$0 sm:$0xff] }
 0xb5a   : > { %2251 = vmatpush3.bf16.msra.mxu1 %v2326_v10 }
 0xc20   : > { %v1598_v19 = vpop.f32.mrb[32].mxu1 }
 0xc21   : > { %v1599_v34 = vadd.f32 %v1598_v19, %v2648_v5  ;;  %v2234_v35 = vpop.f32.mrb[33].mxu1 }
 0xc22   : > { %v1601_v36 = vpop.f32.mrb[34].mxu1 }
 0xc23   : > { %v1602_v37 = vadd.f32 %v1601_v36, %v2650_v6  ;;  %v2235_v38 = vpop.f32.mrb[35].mxu1  ;;  %v1607_v39 = vsel %vm588_vm2, %v1599_v34, 0.0 }
 0xc24   : > { %1608 = vadd.xlane.f32.xlu1 %v1607_v39 }
 0xc25   : > { %v1610_v40 = vsel %vm588_vm2, %v1602_v37, 0.0 }
 0xc26   : > { %1611 = vadd.xlane.f32.xlu0 %v1610_v40 }
 0xcb1   : > { %v1609_v41 = vpop.xlane.xlu1 %1608 }
 0xcb2   : > { %v1614_v42 = vmul.f32 0.03125, %v1609_v41 }
 0xcb3   : > { %v1612_v43 = vpop.xlane.xlu0 %1611 }
 0xcb4   : > { %v1616_v44 = vsub.f32 %v1599_v34, %v1614_v42  ;;  %v1615_v5 = vmul.f32 0.03125, %v1612_v43 }
 0xcb6   : > { %v1617_v45 = vsub.f32 %v1602_v37, %v1615_v5  ;;  %v1618_v46 = vmul.f32 %v1616_v44, %v1616_v44 }
 0xcb8   : > { %v1620_v6 = vsel %vm588_vm2, %v1618_v46, 0.0  ;;  %v1619_v47 = vmul.f32 %v1617_v45, %v1617_v45 }
 0xcb9   : > { %1621 = vadd.xlane.f32.xlu0 %v1620_v6  ;;  %v2068_v6 = vld [vmem:[%s554_s0] ss:$0 sm:$0xff] }
 0xcba   : > { %v1623_v48 = vsel %vm588_vm2, %v1619_v47, 0.0 }
 0xcbb   : > { %1624 = vadd.xlane.f32.xlu1 %v1623_v48 }
 0xd46   : > { %v1622_v56 = vpop.xlane.xlu0 %1621 }
 0xd47   : > { %v1626_v57 = vmul.f32 0.03125, %v1622_v56 }
 0xd48   : > { %v1625_v58 = vpop.xlane.xlu1 %1624 }
 0xd49   : > { %v1628_v59 = vadd.f32 1e-05, %v1626_v57  ;;  %v1627_v60 = vmul.f32 0.03125, %v1625_v58 }
 0xd4b   : > { %2359 = vrsqrt.f32 %v1628_v59  ;;  %v1629_v61 = vadd.f32 1e-05, %v1627_v60 }
 0xd4d   : > { %2361 = vrsqrt.f32 %v1629_v61 }
 0xd55   : > { %v2360_v62 = vpop.eup %2359 }
 0xd56   : > { %v1632_v0 = vmul.f32 %v2360_v62, %v1616_v44 }
 0xd57   : > { %v2362_v1 = vpop.eup %2361 }
 0xd58   : > { %v1640_v2 = vmul.f32 %v2056_v63, %v1632_v0  ;;  %v1633_v4 = vmul.f32 %v2362_v1, %v1617_v45 }
 0xd5a   : > { %v1641_v50 = vmul.f32 %v2056_v63, %v1633_v4  ;;  %v1648_v54 = vadd.f32 %v2057_v9, %v1640_v2 }
 0xd5c   : > { %v1649_v55 = vadd.f32 %v2057_v9, %v1641_v50 }
 0xd5e   : > { %v1650_v7 = vpack.c.bf16 %v1649_v55, %v1648_v54 }
 0xd60   : > { %2241 = vmatmul.mubr.msk.bf16.vlgmr.msra.gmra.mrb[36].mxu0 %vm588_vm2, %v1650_v7 }
 0xe33   : > { %v1711_v12 = vpop.f32.mrb[36].mxu0 }
 0xe34   : > { %v1712_v14 = vadd.f32 %v2058_v11, %v1711_v12  ;;  %v2242_v15 = vpop.f32.mrb[37].mxu0 }
 0xe35   : > { %v1714_v16 = vpop.f32.mrb[38].mxu0 }
 0xe36   : > { %v1715_v17 = vadd.f32 %v2058_v11, %v1714_v16  ;;  %v2243_v18 = vpop.f32.mrb[39].mxu0  ;;  %v1718_v20 = vmax.f32 %v1712_v14, 0.0 }
 0xe38   : > { %v1719_v13 = vmax.f32 %v1715_v17, 0.0 }
 0xe3a   : > { %v1720_v22 = vpack.c.bf16 %v1719_v13, %v1718_v20 }
 0xe3c   : > { %2253 = vmatmul.mubr.msk.bf16.vlgmr.msra.gmra.mrb[36].mxu1 %vm1760_vm8, %v1720_v22 }
 0xf0f   : > { %v1798_v21 = vpop.f32.mrb[36].mxu1 }
 0xf10   : > { %v1799_v23 = vadd.f32 %v2062_v3, %v1798_v21  ;;  %v2254_v24 = vpop.f32.mrb[37].mxu1 }
 0xf11   : > { %v1801_v25 = vpop.f32.mrb[38].mxu1 }
 0xf12   : > { %v1802_v26 = vadd.f32 %v2062_v3, %v1801_v25  ;;  %v2255_v27 = vpop.f32.mrb[39].mxu1  ;;  %v1805_v28 = vadd.f32 %v1799_v23, %v1648_v54 }
 0xf14   : > { %v1809_v29 = vsel %vm588_vm2, %v1805_v28, 0.0  ;;  %v1806_v30 = vadd.f32 %v1802_v26, %v1649_v55 }
 0xf15   : > { %1810 = vadd.xlane.f32.xlu0 %v1809_v29 }
 0xf16   : > { %v1812_v31 = vsel %vm588_vm2, %v1806_v30, 0.0 }
 0xf17   : > { %1813 = vadd.xlane.f32.xlu1 %v1812_v31 }
 0xfa2   : > { %v1811_v32 = vpop.xlane.xlu0 %1810 }
 0xfa3   : > { %v1815_v33 = vmul.f32 0.03125, %v1811_v32 }
 0xfa4   : > { %v1814_v19 = vpop.xlane.xlu1 %1813 }
 0xfa5   : > { %v1817_v34 = vsub.f32 %v1805_v28, %v1815_v33  ;;  %v1816_v35 = vmul.f32 0.03125, %v1814_v19 }
 0xfa7   : > { %v1818_v36 = vsub.f32 %v1806_v30, %v1816_v35  ;;  %v1819_v37 = vmul.f32 %v1817_v34, %v1817_v34 }
 0xfa9   : > { %v1821_v38 = vsel %vm588_vm2, %v1819_v37, 0.0  ;;  %v1820_v39 = vmul.f32 %v1818_v36, %v1818_v36 }
 0xfaa   : > { %1822 = vadd.xlane.f32.xlu0 %v1821_v38 }
 0xfab   : > { %v1824_v40 = vsel %vm588_vm2, %v1820_v39, 0.0 }
 0xfac   : > { %1825 = vadd.xlane.f32.xlu1 %v1824_v40 }
0x1037   : > { %v1823_v41 = vpop.xlane.xlu0 %1822 }
0x1038   : > { %v1827_v42 = vmul.f32 0.03125, %v1823_v41 }
0x1039   : > { %v1826_v43 = vpop.xlane.xlu1 %1825 }
0x103a   : > { %v1829_v44 = vadd.f32 1e-05, %v1827_v42  ;;  %v1828_v5 = vmul.f32 0.03125, %v1826_v43 }
0x103c   : > { %2363 = vrsqrt.f32 %v1829_v44  ;;  %v1830_v45 = vadd.f32 1e-05, %v1828_v5 }
0x103e   : > { %2365 = vrsqrt.f32 %v1830_v45 }
0x1046   : > { %v2364_v46 = vpop.eup %2363 }
0x1047   : > { %v1833_v47 = vmul.f32 %v2364_v46, %v1817_v34 }
0x1048   : > { %v2366_v48 = vpop.eup %2365 }
0x1049   : > { %v1841_v51 = vmul.f32 %v2068_v6, %v1833_v47  ;;  %v1834_v52 = vmul.f32 %v2366_v48, %v1818_v36 }
0x104b   : > { %v1842_v53 = vmul.f32 %v2068_v6, %v1834_v52  ;;  %v1849_v56 = vadd.f32 %v2069_v49, %v1841_v51 }
0x104d   : > { %v1850_v57 = vadd.f32 %v2069_v49, %v1842_v53  ;;  %1851 = vst.msk [vmem:[#allocation6] sm:$0xff] %vm588_vm2, %v1849_v56 }
0x104f   : > { %1852 = vst.msk [vmem:[#allocation6 + $0x8] sm:$0xff] %vm588_vm2, %v1850_v57 }
0x1050   : > { %2408 = shalt.err (!%p2405_p1)
}
0x1051   : > { %s2409_s16 = scalar_lea.hbm %s2909_s11, 256 }
0x1052   : > { %p2410_p2 = scmp.ne.s32.totalorder %s2909_s11, %s2409_s16  ;;  %p2415_p9 = scmp.lt.u32.totalorder %s2409_s16, %s2909_s11 }
0x1054   : > { %p2411_p5 = pnand %p2410_p2, %p2860_p6 }
0x1056   : > { %p2412_p7 = pneg %p2411_p5 }
0x1058   : > { %p2417_p3 = pnand %p2415_p9, %p2412_p7 }
0x105a   : > { %2420 = shalt.err (!%p2417_p3)
}
0x105b   : > { %s2473_s25 = smov 128  }
0x105c   : > { %2261 = dma.vmem_to_hbm [thread:$0]  (%p2860_p6), %s1863_s22, 256, %s2909_s11, [#allocation5], %s2473_s25, %s2473_s25, %s2469_s20  }
0x105d   : > { %2438 = dma.done.wait (%p2860_p6), [#allocation5], 256  }
0x105e   : > { %2440 = vsyncadd (%p2860_p6), [#allocation5], 4294967040 }
0x105f PF: > { %s23_s19 = sadd.s32 1, %s2451_s19   ;;  %s2932_s12 = sld [smem:[#allocation9_spill]] }
0x1060   : > { %p20_p4 = scmp.ge.s32.totalorder %s23_s19, 4   ;;  %s2933_s17 = smov %s2447_s18 }
0x1062   :  { %22 = sbr.rel (!%p20_p4) target bundleno = 8 (0x8), region = 129 }
0x1065   : > { %s2934_s18 = smov %s2932_s12 }
0x1069   :  { %1878 = vsyncpa [#allocation4], 1 }
0x106a   :  { %1880 = vsyncpa [#allocation4 + $0x1], 1 }
0x106b   :  { %1881 = vsyncpa [#allocation5], 1 }
0x106c   :  { %1883 = vsyncpa [#allocation5 + $0x1], 1 }

</bundles_post_ra>
